<compile_context>
chip_gen: v5e
topology: v5e:2x2
jax: 0.10.0
libtpu: 0.0.40
codegen_flags: <defaults>
</compile_context>

<pallas_src>
import functools

import jax
import jax.numpy as jnp
from jax.experimental import pallas as pl
from jax.experimental.pallas import tpu as pltpu


def _attention_kernel(x_ref, wq_ref, bq_ref, wk_ref, bk_ref, wv_ref, bv_ref,
                      wp_ref, bp_ref, o_ref, acc_ref,
                      *, num_heads, head_dim, scale, n_true, batched_heads):
    blk_b, n_pad, c = x_ref.shape
    rows = blk_b * n_pad
    cdt = x_ref.dtype  # MXU input dtype (bf16 when the wrapper casts it)

    # Fold the batch block into the matmul M dimension for the projections.
    x2 = x_ref[...].reshape(rows, c)

    # Three separate projections; f32 accumulation on the MXU, f32 biases.
    q2 = jnp.dot(x2, wq_ref[...], preferred_element_type=jnp.float32) + bq_ref[...]
    k2 = jnp.dot(x2, wk_ref[...], preferred_element_type=jnp.float32) + bk_ref[...]
    v2 = jnp.dot(x2, wv_ref[...], preferred_element_type=jnp.float32) + bv_ref[...]
    # Fold the softmax scale into q (rows*C VPU work instead of N*N).
    q2 = (q2 * scale).astype(cdt)
    k2 = k2.astype(cdt)
    v2 = v2.astype(cdt)

    if batched_heads:
        # Preferred path: all heads batched into a single score / PV einsum
        # (one relayout per tensor instead of 3 sub-128-lane slices per head).
        q4 = q2.reshape(blk_b, n_pad, num_heads, head_dim)
        k4 = k2.reshape(blk_b, n_pad, num_heads, head_dim)
        v4 = v2.reshape(blk_b, n_pad, num_heads, head_dim)

        s = jnp.einsum('bnhd,bmhd->bhnm', q4, k4,
                       preferred_element_type=jnp.float32)
        if n_pad != n_true:  # static: mask padded key positions
            key_ids = jax.lax.broadcasted_iota(jnp.int32, s.shape, 3)
            s = jnp.where(key_ids < n_true, s, jnp.float32(-1e30))

        s = s - jnp.max(s, axis=-1, keepdims=True)
        p = jnp.exp(s)
        l = jnp.sum(p, axis=-1, keepdims=True)                # (blk_b, H, n, 1)
        o = jnp.einsum('bhnm,bmhd->bhnd', p.astype(cdt), v4,
                       preferred_element_type=jnp.float32)
        # Normalize after the PV matmul (rows*D mults, not rows*N); EUP recip.
        o = o * pl.reciprocal(l, approx=True)

        # Assemble the (rows, C) slab with >=128-lane aligned group stores so
        # column writes are unmasked vst (not masked vst.msk).
        gsz = max(1, min(num_heads, 128 // head_dim))
        while num_heads % gsz:
            gsz -= 1
        for g0 in range(0, num_heads, gsz):
            parts = [o[:, h].reshape(rows, head_dim) for h in range(g0, g0 + gsz)]
            grp = parts[0] if len(parts) == 1 else jnp.concatenate(parts, axis=-1)
            acc_ref[:, g0 * head_dim:(g0 + gsz) * head_dim] = grp.astype(acc_ref.dtype)
    else:
        # Fallback path: only ops guaranteed to lower on every Mosaic version
        # (per-head loop, 3D single-batch-dim einsums, direct column stores).
        for h in range(num_heads):
            lo = h * head_dim
            hi = lo + head_dim
            qh = q2[:, lo:hi].reshape(blk_b, n_pad, head_dim)
            kh = k2[:, lo:hi].reshape(blk_b, n_pad, head_dim)
            vh = v2[:, lo:hi].reshape(blk_b, n_pad, head_dim)

            s = jnp.einsum('bnd,bmd->bnm', qh, kh,
                           preferred_element_type=jnp.float32)
            if n_pad != n_true:
                key_ids = jax.lax.broadcasted_iota(jnp.int32, s.shape, 2)
                s = jnp.where(key_ids < n_true, s, jnp.float32(-1e30))

            s = s - jnp.max(s, axis=-1, keepdims=True)
            p = jnp.exp(s)
            l = jnp.sum(p, axis=-1, keepdims=True)
            oh = jnp.einsum('bnm,bmd->bnd', p.astype(cdt), vh,
                            preferred_element_type=jnp.float32)
            oh = oh * pl.reciprocal(l, approx=True)
            acc_ref[:, lo:hi] = oh.reshape(rows, head_dim).astype(acc_ref.dtype)

    # Output projection on the assembled lane-dense slab.
    out = jnp.dot(acc_ref[...], wp_ref[...],
                  preferred_element_type=jnp.float32) + bp_ref[...]
    o_ref[...] = out.reshape(blk_b, n_pad, c).astype(o_ref.dtype)

    # TODO(synk): attn_drop / proj_drop are identity for dropout=0.0 and are omitted.


def _vmem_budget():
    """(vmem_limit_bytes, target_rows) tuned per TPU generation."""
    try:
        cap = pltpu.get_tpu_info().vmem_capacity_bytes
    except Exception:
        cap = 64 * 1024 * 1024
    if cap >= 96 * 1024 * 1024:          # v5e / v6e: 128 MiB physical VMEM
        return 100 * 1024 * 1024, 1024   # fat tiles amortize per-step overhead
    return 40 * 1024 * 1024, 256         # v7x: 64 MiB physical -> stay conservative


def _pick_block_b(batch, n_pad, c, num_heads, itemsize, budget_bytes, target_rows):
    """Largest divisor of `batch` whose per-step working set fits the budget,
    preferring >= 2 grid steps (megacore sharding / pipelining)."""

    def footprint(bb):
        rows = bb * n_pad
        xb = 2 * rows * c * itemsize                      # double-buffered input
        ob = 2 * rows * c * itemsize                      # double-buffered output
        wts = 8 * c * c * itemsize                        # weights (worst case 2x)
        qkv = 3 * rows * c * 4                            # f32 q/k/v
        sco = 2 * bb * num_heads * n_pad * n_pad * 4      # scores + exp
        oin = 2 * rows * c * 4                            # attn out + proj temp
        acc = rows * c * itemsize                         # slab scratch
        return xb + ob + wts + qkv + sco + oin + acc

    bb = max(1, min(batch, max(1, target_rows // n_pad)))
    while batch % bb:
        bb -= 1
    while bb > 1 and footprint(bb) > budget_bytes:
        bb -= 1
        while batch % bb:
            bb -= 1
    if batch > 1 and batch // bb < 2:
        bb = max(1, bb // 2)
        while batch % bb:
            bb -= 1
    return bb


# (batched_heads, single_buffer_weights) combination proven to lower on this host.
_PREFERRED_MODE = None


def attention_pallas(x, w_qkv, b_qkv, w_proj, b_proj, *, num_heads, mxu_dtype=None):
    """Pallas TPU forward of the ViT Attention block.  x: (B, N, C)."""
    global _PREFERRED_MODE
    B, N, C = x.shape
    head_dim = C // num_heads
    scale = head_dim ** (-0.5)
    out_dtype = x.dtype

    cdt = jnp.dtype(mxu_dtype) if mxu_dtype is not None else jnp.dtype(x.dtype)
    itemsize = cdt.itemsize

    # dtype-aware sublane padding (f32->8, bf16->16, int8->32); for large N pad
    # the key/lane axis all the way to a 128 multiple so the score-tile softmax
    # and PV contraction run on unmasked full-width lanes.
    sub_mult = 8 * max(1, 4 // itemsize)
    if N > 64:
        n_pad = ((N + 127) // 128) * 128
    else:
        n_pad = ((N + sub_mult - 1) // sub_mult) * sub_mult

    x_k = x.astype(cdt)
    if n_pad != N:
        x_k = jnp.pad(x_k, ((0, 0), (0, n_pad - N), (0, 0)))

    # Layout plumbing in the wrapper: split the fused qkv params per projection,
    # cast weights to the MXU dtype (bf16 recommended), keep biases in f32.
    w_q = w_qkv[:, :C].astype(cdt)
    w_k = w_qkv[:, C:2 * C].astype(cdt)
    w_v = w_qkv[:, 2 * C:].astype(cdt)
    w_p = w_proj.astype(cdt)
    b_q = b_qkv[:, :C].astype(jnp.float32)
    b_k = b_qkv[:, C:2 * C].astype(jnp.float32)
    b_v = b_qkv[:, 2 * C:].astype(jnp.float32)
    b_p = b_proj.astype(jnp.float32)

    vmem_limit, target_rows = _vmem_budget()
    block_b = _pick_block_b(B, n_pad, C, num_heads, itemsize, vmem_limit, target_rows)
    rows = block_b * n_pad
    # Note: when B == 1 the batch grid has a single step; a second parallel axis
    # (query tiles / head groups) would be needed to feed both v7x TensorCores.

    def build(batched_heads, single_buffer_weights):
        kernel = functools.partial(
            _attention_kernel, num_heads=num_heads, head_dim=head_dim,
            scale=scale, n_true=N, batched_heads=batched_heads)

        def wspec(shape):
            # Grid-invariant weights: single-buffer them when supported to halve
            # their VMEM footprint (significant under v7x's 64 MiB VMEM).
            if single_buffer_weights:
                return pl.BlockSpec(shape, lambda b: (0,) * len(shape),
                                    pipeline_mode=pl.Buffered(1))
            return pl.BlockSpec(shape, lambda b: (0,) * len(shape))

        return pl.pallas_call(
            kernel,
            out_shape=jax.ShapeDtypeStruct((B, n_pad, C), out_dtype),
            grid_spec=pltpu.PrefetchScalarGridSpec(
                num_scalar_prefetch=0,
                grid=(B // block_b,),
                in_specs=[
                    pl.BlockSpec((block_b, n_pad, C), lambda b: (b, 0, 0)),
                    wspec((C, C)), wspec((1, C)),   # q
                    wspec((C, C)), wspec((1, C)),   # k
                    wspec((C, C)), wspec((1, C)),   # v
                    wspec((C, C)), wspec((1, C)),   # proj
                ],
                out_specs=pl.BlockSpec((block_b, n_pad, C), lambda b: (b, 0, 0)),
                scratch_shapes=[pltpu.VMEM((rows, C), cdt)],
            ),
            compiler_params=pltpu.CompilerParams(
                dimension_semantics=("parallel",),
                vmem_limit_bytes=vmem_limit,
            ),
        )

    args = (x_k, w_q, b_q, w_k, b_k, w_v, b_v, w_p, b_p)

    modes = [(True, True), (True, False), (False, True), (False, False)]
    if _PREFERRED_MODE in modes:
        modes.remove(_PREFERRED_MODE)
        modes.insert(0, _PREFERRED_MODE)

    out = None
    last_err = None
    for mode in modes:
        try:
            out = build(*mode)(*args)
            _PREFERRED_MODE = mode
            break
        except Exception as e:  # lowering path unsupported -> try the next mode
            last_err = e
    if out is None:
        raise last_err

    return out[:, :N, :] if n_pad != N else out


def attention_reference(x, w_qkv, b_qkv, w_proj, b_proj, *, num_heads):
    """Plain-JAX reference mirroring the PyTorch forward exactly."""
    B, N, C = x.shape
    head_dim = C // num_heads
    scale = head_dim ** (-0.5)

    qkv = x @ w_qkv + b_qkv[0]                                    # (B, N, 3C)
    qkv = qkv.reshape(B, N, 3, num_heads, head_dim)
    qkv = jnp.transpose(qkv, (2, 0, 3, 1, 4))                     # (3, B, H, N, D)
    q, k, v = qkv[0], qkv[1], qkv[2]
    attn = jnp.einsum("bhnd,bhmd->bhnm", q, k) * scale
    attn = jax.nn.softmax(attn, axis=-1)
    out = jnp.einsum("bhnm,bhmd->bhnd", attn, v)                  # (B, H, N, D)
    out = jnp.transpose(out, (0, 2, 1, 3)).reshape(B, N, C)
    return out @ w_proj + b_proj[0]


if __name__ == "__main__":
    B, C, num_heads = 2, 32, 4

    key = jax.random.PRNGKey(0)
    k_x, k_wqkv, k_bqkv, k_wproj, k_bproj = jax.random.split(key, 5)

    # nn.Linear(dim, 3*dim): torch weight (3C, C) -> stored transposed (C, 3C).
    w_qkv = jax.random.normal(k_wqkv, (C, 3 * C), dtype=jnp.float32) * 0.05
    b_qkv = jax.random.normal(k_bqkv, (1, 3 * C), dtype=jnp.float32) * 0.05
    w_proj = jax.random.normal(k_wproj, (C, C), dtype=jnp.float32) * 0.05
    b_proj = jax.random.normal(k_bproj, (1, C), dtype=jnp.float32) * 0.05

    # Case 1: aligned token count (N multiple of 8), f32 end-to-end.
    N = 8
    x = jax.random.normal(k_x, (B, N, C), dtype=jnp.float32)
    out = jax.block_until_ready(
        attention_pallas(x, w_qkv, b_qkv, w_proj, b_proj, num_heads=num_heads))
    ref = jax.block_until_ready(
        attention_reference(x, w_qkv, b_qkv, w_proj, b_proj, num_heads=num_heads))
    assert out.shape == (B, N, C), out.shape
    assert jnp.allclose(out, ref, atol=2e-3, rtol=2e-3), \
        float(jnp.max(jnp.abs(out - ref)))

    # Case 2: odd token count (exercises sublane padding + key masking).
    N2 = 7
    x2 = jax.random.normal(k_x, (B, N2, C), dtype=jnp.float32)
    out2 = jax.block_until_ready(
        attention_pallas(x2, w_qkv, b_qkv, w_proj, b_proj, num_heads=num_heads))
    ref2 = jax.block_until_ready(
        attention_reference(x2, w_qkv, b_qkv, w_proj, b_proj, num_heads=num_heads))
    assert out2.shape == (B, N2, C), out2.shape
    assert jnp.allclose(out2, ref2, atol=2e-3, rtol=2e-3), \
        float(jnp.max(jnp.abs(out2 - ref2)))

    # Case 3: bf16 MXU inputs (production setting from the perf review);
    # f32 accumulation, compared against the f32 reference with a looser tol.
    out3 = jax.block_until_ready(
        attention_pallas(x, w_qkv, b_qkv, w_proj, b_proj,
                         num_heads=num_heads, mxu_dtype=jnp.bfloat16))
    assert out3.shape == (B, N, C), out3.shape
    assert jnp.allclose(out3, ref, atol=2e-2, rtol=2e-2), \
        float(jnp.max(jnp.abs(out3 - ref)))

    print("KERNEL_OK")
</pallas_src>

<mosaic_0001>
module attributes {stable_mosaic.version = 11 : i64} {
  func.func @_attention_kernel(%arg0: i32, %arg1: memref<1x8x32xf32, #tpu.memory_space<vmem>>, %arg2: memref<32x32xf32, #tpu.memory_space<vmem>>, %arg3: memref<1x32xf32, #tpu.memory_space<vmem>>, %arg4: memref<32x32xf32, #tpu.memory_space<vmem>>, %arg5: memref<1x32xf32, #tpu.memory_space<vmem>>, %arg6: memref<32x32xf32, #tpu.memory_space<vmem>>, %arg7: memref<1x32xf32, #tpu.memory_space<vmem>>, %arg8: memref<32x32xf32, #tpu.memory_space<vmem>>, %arg9: memref<1x32xf32, #tpu.memory_space<vmem>>, %arg10: memref<1x8x32xf32, #tpu.memory_space<vmem>>, %arg11: memref<8x32xf32, #tpu.memory_space<vmem>>) attributes {dimension_semantics = [#tpu.dimension_semantics<parallel>], iteration_bounds = array<i64: 2>, scalar_prefetch = 0 : i64, scratch_operands = 1 : i64, tpu.core_type = #tpu.core_type<tc>, window_params = [{transform_indices = @transform_0, window_bounds = array<i64: 1, 8, 32>}, {pipeline_mode = #tpu.pipeline_mode<synchronous>, transform_indices = @transform_1, window_bounds = array<i64: 32, 32>}, {pipeline_mode = #tpu.pipeline_mode<synchronous>, transform_indices = @transform_2, window_bounds = array<i64: 1, 32>}, {pipeline_mode = #tpu.pipeline_mode<synchronous>, transform_indices = @transform_3, window_bounds = array<i64: 32, 32>}, {pipeline_mode = #tpu.pipeline_mode<synchronous>, transform_indices = @transform_4, window_bounds = array<i64: 1, 32>}, {pipeline_mode = #tpu.pipeline_mode<synchronous>, transform_indices = @transform_5, window_bounds = array<i64: 32, 32>}, {pipeline_mode = #tpu.pipeline_mode<synchronous>, transform_indices = @transform_6, window_bounds = array<i64: 1, 32>}, {pipeline_mode = #tpu.pipeline_mode<synchronous>, transform_indices = @transform_7, window_bounds = array<i64: 32, 32>}, {pipeline_mode = #tpu.pipeline_mode<synchronous>, transform_indices = @transform_8, window_bounds = array<i64: 1, 32>}, {transform_indices = @transform_9, window_bounds = array<i64: 1, 8, 32>}]} {
    %c0 = arith.constant 0 : index
    %c0_0 = arith.constant 0 : index
    %c0_1 = arith.constant 0 : index
    %0 = vector.load %arg1[%c0, %c0_0, %c0_1] : memref<1x8x32xf32, #tpu.memory_space<vmem>>, vector<1x8x32xf32>
    %1 = vector.shape_cast %0 : vector<1x8x32xf32> to vector<8x32xf32>
    %c0_2 = arith.constant 0 : index
    %c0_3 = arith.constant 0 : index
    %2 = vector.load %arg2[%c0_2, %c0_3] : memref<32x32xf32, #tpu.memory_space<vmem>>, vector<32x32xf32>
    %cst = arith.constant dense<0.000000e+00> : vector<8x32xf32>
    %3 = tpu.matmul %1, %2, %cst {dimension_numbers = #tpu.dot_dimension_numbers<[1], [0], [0], [1], [0, 0, 1, 1], [], []>} : vector<8x32xf32>, vector<32x32xf32>, vector<8x32xf32> -> vector<8x32xf32>
    %c0_4 = arith.constant 0 : index
    %c0_5 = arith.constant 0 : index
    %4 = vector.load %arg3[%c0_4, %c0_5] : memref<1x32xf32, #tpu.memory_space<vmem>>, vector<1x32xf32>
    %5 = vector.broadcast %4 : vector<1x32xf32> to vector<8x32xf32>
    %6 = arith.addf %3, %5 : vector<8x32xf32>
    %c0_6 = arith.constant 0 : index
    %c0_7 = arith.constant 0 : index
    %7 = vector.load %arg4[%c0_6, %c0_7] : memref<32x32xf32, #tpu.memory_space<vmem>>, vector<32x32xf32>
    %cst_8 = arith.constant dense<0.000000e+00> : vector<8x32xf32>
    %8 = tpu.matmul %1, %7, %cst_8 {dimension_numbers = #tpu.dot_dimension_numbers<[1], [0], [0], [1], [0, 0, 1, 1], [], []>} : vector<8x32xf32>, vector<32x32xf32>, vector<8x32xf32> -> vector<8x32xf32>
    %c0_9 = arith.constant 0 : index
    %c0_10 = arith.constant 0 : index
    %9 = vector.load %arg5[%c0_9, %c0_10] : memref<1x32xf32, #tpu.memory_space<vmem>>, vector<1x32xf32>
    %10 = vector.broadcast %9 : vector<1x32xf32> to vector<8x32xf32>
    %11 = arith.addf %8, %10 : vector<8x32xf32>
    %c0_11 = arith.constant 0 : index
    %c0_12 = arith.constant 0 : index
    %12 = vector.load %arg6[%c0_11, %c0_12] : memref<32x32xf32, #tpu.memory_space<vmem>>, vector<32x32xf32>
    %cst_13 = arith.constant dense<0.000000e+00> : vector<8x32xf32>
    %13 = tpu.matmul %1, %12, %cst_13 {dimension_numbers = #tpu.dot_dimension_numbers<[1], [0], [0], [1], [0, 0, 1, 1], [], []>} : vector<8x32xf32>, vector<32x32xf32>, vector<8x32xf32> -> vector<8x32xf32>
    %c0_14 = arith.constant 0 : index
    %c0_15 = arith.constant 0 : index
    %14 = vector.load %arg7[%c0_14, %c0_15] : memref<1x32xf32, #tpu.memory_space<vmem>>, vector<1x32xf32>
    %15 = vector.broadcast %14 : vector<1x32xf32> to vector<8x32xf32>
    %16 = arith.addf %13, %15 : vector<8x32xf32>
    %cst_16 = arith.constant 0.353553385 : f32
    %17 = vector.broadcast %cst_16 : f32 to vector<8x32xf32>
    %18 = arith.mulf %6, %17 : vector<8x32xf32>
    %19 = vector.extract_strided_slice %18 {offsets = [0, 0], sizes = [8, 8], strides = [1, 1]} : vector<8x32xf32> to vector<8x8xf32>
    %20 = vector.shape_cast %19 : vector<8x8xf32> to vector<1x8x8xf32>
    %21 = vector.extract_strided_slice %11 {offsets = [0, 0], sizes = [8, 8], strides = [1, 1]} : vector<8x32xf32> to vector<8x8xf32>
    %22 = vector.shape_cast %21 : vector<8x8xf32> to vector<1x8x8xf32>
    %23 = vector.extract_strided_slice %16 {offsets = [0, 0], sizes = [8, 8], strides = [1, 1]} : vector<8x32xf32> to vector<8x8xf32>
    %24 = vector.shape_cast %23 : vector<8x8xf32> to vector<1x8x8xf32>
    "tpu.trace_start"() <{level = 10 : i32, message = "bnd,bmd->bnm"}> : () -> ()
    %cst_17 = arith.constant dense<0.000000e+00> : vector<1x8x8xf32>
    %25 = tpu.matmul %20, %22, %cst_17 {dimension_numbers = #tpu.dot_dimension_numbers<[2], [2], [1], [1], [0, 0, 0, 1, 1, 1], [0], [0]>} : vector<1x8x8xf32>, vector<1x8x8xf32>, vector<1x8x8xf32> -> vector<1x8x8xf32>
    "tpu.trace_stop"() : () -> ()
    %cst_18 = arith.constant dense<0xFF800000> : vector<1x8xf32>
    %26 = vector.multi_reduction <maximumf>, %25, %cst_18 [2] : vector<1x8x8xf32> to vector<1x8xf32>
    %27 = vector.shape_cast %26 : vector<1x8xf32> to vector<1x8x1xf32>
    %28 = vector.broadcast %27 : vector<1x8x1xf32> to vector<1x8x8xf32>
    %29 = arith.subf %25, %28 : vector<1x8x8xf32>
    %30 = math.exp %29 : vector<1x8x8xf32>
    %cst_19 = arith.constant dense<0.000000e+00> : vector<1x8xf32>
    %31 = vector.multi_reduction <add>, %30, %cst_19 [2] : vector<1x8x8xf32> to vector<1x8xf32>
    %32 = vector.shape_cast %31 : vector<1x8xf32> to vector<1x8x1xf32>
    "tpu.trace_start"() <{level = 10 : i32, message = "bnm,bmd->bnd"}> : () -> ()
    %cst_20 = arith.constant dense<0.000000e+00> : vector<1x8x8xf32>
    %33 = tpu.matmul %30, %24, %cst_20 {dimension_numbers = #tpu.dot_dimension_numbers<[2], [1], [1], [2], [0, 0, 0, 1, 1, 2], [0], [0]>} : vector<1x8x8xf32>, vector<1x8x8xf32>, vector<1x8x8xf32> -> vector<1x8x8xf32>
    "tpu.trace_stop"() : () -> ()
    %34 = tpu.reciprocal %32 {approx = true} : vector<1x8x1xf32> -> vector<1x8x1xf32>
    %35 = vector.broadcast %34 : vector<1x8x1xf32> to vector<1x8x8xf32>
    %36 = arith.mulf %33, %35 : vector<1x8x8xf32>
    %37 = vector.shape_cast %36 : vector<1x8x8xf32> to vector<8x8xf32>
    %c0_21 = arith.constant 0 : index
    %c0_22 = arith.constant 0 : index
    %38 = vector.load %arg11[%c0_21, %c0_22] : memref<8x32xf32, #tpu.memory_space<vmem>>, vector<8x8xf32>
    tpu.vector_store %arg11[%c0_21, %c0_22], %37 {strides = array<i32>} : memref<8x32xf32, #tpu.memory_space<vmem>>, vector<8x8xf32>,
    %39 = vector.extract_strided_slice %18 {offsets = [0, 8], sizes = [8, 8], strides = [1, 1]} : vector<8x32xf32> to vector<8x8xf32>
    %40 = vector.shape_cast %39 : vector<8x8xf32> to vector<1x8x8xf32>
    %41 = vector.extract_strided_slice %11 {offsets = [0, 8], sizes = [8, 8], strides = [1, 1]} : vector<8x32xf32> to vector<8x8xf32>
    %42 = vector.shape_cast %41 : vector<8x8xf32> to vector<1x8x8xf32>
    %43 = vector.extract_strided_slice %16 {offsets = [0, 8], sizes = [8, 8], strides = [1, 1]} : vector<8x32xf32> to vector<8x8xf32>
    %44 = vector.shape_cast %43 : vector<8x8xf32> to vector<1x8x8xf32>
    "tpu.trace_start"() <{level = 10 : i32, message = "bnd,bmd->bnm"}> : () -> ()
    %cst_23 = arith.constant dense<0.000000e+00> : vector<1x8x8xf32>
    %45 = tpu.matmul %40, %42, %cst_23 {dimension_numbers = #tpu.dot_dimension_numbers<[2], [2], [1], [1], [0, 0, 0, 1, 1, 1], [0], [0]>} : vector<1x8x8xf32>, vector<1x8x8xf32>, vector<1x8x8xf32> -> vector<1x8x8xf32>
    "tpu.trace_stop"() : () -> ()
    %cst_24 = arith.constant dense<0xFF800000> : vector<1x8xf32>
    %46 = vector.multi_reduction <maximumf>, %45, %cst_24 [2] : vector<1x8x8xf32> to vector<1x8xf32>
    %47 = vector.shape_cast %46 : vector<1x8xf32> to vector<1x8x1xf32>
    %48 = vector.broadcast %47 : vector<1x8x1xf32> to vector<1x8x8xf32>
    %49 = arith.subf %45, %48 : vector<1x8x8xf32>
    %50 = math.exp %49 : vector<1x8x8xf32>
    %cst_25 = arith.constant dense<0.000000e+00> : vector<1x8xf32>
    %51 = vector.multi_reduction <add>, %50, %cst_25 [2] : vector<1x8x8xf32> to vector<1x8xf32>
    %52 = vector.shape_cast %51 : vector<1x8xf32> to vector<1x8x1xf32>
    "tpu.trace_start"() <{level = 10 : i32, message = "bnm,bmd->bnd"}> : () -> ()
    %cst_26 = arith.constant dense<0.000000e+00> : vector<1x8x8xf32>
    %53 = tpu.matmul %50, %44, %cst_26 {dimension_numbers = #tpu.dot_dimension_numbers<[2], [1], [1], [2], [0, 0, 0, 1, 1, 2], [0], [0]>} : vector<1x8x8xf32>, vector<1x8x8xf32>, vector<1x8x8xf32> -> vector<1x8x8xf32>
    "tpu.trace_stop"() : () -> ()
    %54 = tpu.reciprocal %52 {approx = true} : vector<1x8x1xf32> -> vector<1x8x1xf32>
    %55 = vector.broadcast %54 : vector<1x8x1xf32> to vector<1x8x8xf32>
    %56 = arith.mulf %53, %55 : vector<1x8x8xf32>
    %57 = vector.shape_cast %56 : vector<1x8x8xf32> to vector<8x8xf32>
    %c0_27 = arith.constant 0 : index
    %c8 = arith.constant 8 : index
    %58 = vector.load %arg11[%c0_27, %c8] : memref<8x32xf32, #tpu.memory_space<vmem>>, vector<8x8xf32>
    tpu.vector_store %arg11[%c0_27, %c8], %57 {strides = array<i32>} : memref<8x32xf32, #tpu.memory_space<vmem>>, vector<8x8xf32>,
    %59 = vector.extract_strided_slice %18 {offsets = [0, 16], sizes = [8, 8], strides = [1, 1]} : vector<8x32xf32> to vector<8x8xf32>
    %60 = vector.shape_cast %59 : vector<8x8xf32> to vector<1x8x8xf32>
    %61 = vector.extract_strided_slice %11 {offsets = [0, 16], sizes = [8, 8], strides = [1, 1]} : vector<8x32xf32> to vector<8x8xf32>
    %62 = vector.shape_cast %61 : vector<8x8xf32> to vector<1x8x8xf32>
    %63 = vector.extract_strided_slice %16 {offsets = [0, 16], sizes = [8, 8], strides = [1, 1]} : vector<8x32xf32> to vector<8x8xf32>
    %64 = vector.shape_cast %63 : vector<8x8xf32> to vector<1x8x8xf32>
    "tpu.trace_start"() <{level = 10 : i32, message = "bnd,bmd->bnm"}> : () -> ()
    %cst_28 = arith.constant dense<0.000000e+00> : vector<1x8x8xf32>
    %65 = tpu.matmul %60, %62, %cst_28 {dimension_numbers = #tpu.dot_dimension_numbers<[2], [2], [1], [1], [0, 0, 0, 1, 1, 1], [0], [0]>} : vector<1x8x8xf32>, vector<1x8x8xf32>, vector<1x8x8xf32> -> vector<1x8x8xf32>
    "tpu.trace_stop"() : () -> ()
    %cst_29 = arith.constant dense<0xFF800000> : vector<1x8xf32>
    %66 = vector.multi_reduction <maximumf>, %65, %cst_29 [2] : vector<1x8x8xf32> to vector<1x8xf32>
    %67 = vector.shape_cast %66 : vector<1x8xf32> to vector<1x8x1xf32>
    %68 = vector.broadcast %67 : vector<1x8x1xf32> to vector<1x8x8xf32>
    %69 = arith.subf %65, %68 : vector<1x8x8xf32>
    %70 = math.exp %69 : vector<1x8x8xf32>
    %cst_30 = arith.constant dense<0.000000e+00> : vector<1x8xf32>
    %71 = vector.multi_reduction <add>, %70, %cst_30 [2] : vector<1x8x8xf32> to vector<1x8xf32>
    %72 = vector.shape_cast %71 : vector<1x8xf32> to vector<1x8x1xf32>
    "tpu.trace_start"() <{level = 10 : i32, message = "bnm,bmd->bnd"}> : () -> ()
    %cst_31 = arith.constant dense<0.000000e+00> : vector<1x8x8xf32>
    %73 = tpu.matmul %70, %64, %cst_31 {dimension_numbers = #tpu.dot_dimension_numbers<[2], [1], [1], [2], [0, 0, 0, 1, 1, 2], [0], [0]>} : vector<1x8x8xf32>, vector<1x8x8xf32>, vector<1x8x8xf32> -> vector<1x8x8xf32>
    "tpu.trace_stop"() : () -> ()
    %74 = tpu.reciprocal %72 {approx = true} : vector<1x8x1xf32> -> vector<1x8x1xf32>
    %75 = vector.broadcast %74 : vector<1x8x1xf32> to vector<1x8x8xf32>
    %76 = arith.mulf %73, %75 : vector<1x8x8xf32>
    %77 = vector.shape_cast %76 : vector<1x8x8xf32> to vector<8x8xf32>
    %c0_32 = arith.constant 0 : index
    %c16 = arith.constant 16 : index
    %78 = vector.load %arg11[%c0_32, %c16] : memref<8x32xf32, #tpu.memory_space<vmem>>, vector<8x8xf32>
    tpu.vector_store %arg11[%c0_32, %c16], %77 {strides = array<i32>} : memref<8x32xf32, #tpu.memory_space<vmem>>, vector<8x8xf32>,
    %79 = vector.extract_strided_slice %18 {offsets = [0, 24], sizes = [8, 8], strides = [1, 1]} : vector<8x32xf32> to vector<8x8xf32>
    %80 = vector.shape_cast %79 : vector<8x8xf32> to vector<1x8x8xf32>
    %81 = vector.extract_strided_slice %11 {offsets = [0, 24], sizes = [8, 8], strides = [1, 1]} : vector<8x32xf32> to vector<8x8xf32>
    %82 = vector.shape_cast %81 : vector<8x8xf32> to vector<1x8x8xf32>
    %83 = vector.extract_strided_slice %16 {offsets = [0, 24], sizes = [8, 8], strides = [1, 1]} : vector<8x32xf32> to vector<8x8xf32>
    %84 = vector.shape_cast %83 : vector<8x8xf32> to vector<1x8x8xf32>
    "tpu.trace_start"() <{level = 10 : i32, message = "bnd,bmd->bnm"}> : () -> ()
    %cst_33 = arith.constant dense<0.000000e+00> : vector<1x8x8xf32>
    %85 = tpu.matmul %80, %82, %cst_33 {dimension_numbers = #tpu.dot_dimension_numbers<[2], [2], [1], [1], [0, 0, 0, 1, 1, 1], [0], [0]>} : vector<1x8x8xf32>, vector<1x8x8xf32>, vector<1x8x8xf32> -> vector<1x8x8xf32>
    "tpu.trace_stop"() : () -> ()
    %cst_34 = arith.constant dense<0xFF800000> : vector<1x8xf32>
    %86 = vector.multi_reduction <maximumf>, %85, %cst_34 [2] : vector<1x8x8xf32> to vector<1x8xf32>
    %87 = vector.shape_cast %86 : vector<1x8xf32> to vector<1x8x1xf32>
    %88 = vector.broadcast %87 : vector<1x8x1xf32> to vector<1x8x8xf32>
    %89 = arith.subf %85, %88 : vector<1x8x8xf32>
    %90 = math.exp %89 : vector<1x8x8xf32>
    %cst_35 = arith.constant dense<0.000000e+00> : vector<1x8xf32>
    %91 = vector.multi_reduction <add>, %90, %cst_35 [2] : vector<1x8x8xf32> to vector<1x8xf32>
    %92 = vector.shape_cast %91 : vector<1x8xf32> to vector<1x8x1xf32>
    "tpu.trace_start"() <{level = 10 : i32, message = "bnm,bmd->bnd"}> : () -> ()
    %cst_36 = arith.constant dense<0.000000e+00> : vector<1x8x8xf32>
    %93 = tpu.matmul %90, %84, %cst_36 {dimension_numbers = #tpu.dot_dimension_numbers<[2], [1], [1], [2], [0, 0, 0, 1, 1, 2], [0], [0]>} : vector<1x8x8xf32>, vector<1x8x8xf32>, vector<1x8x8xf32> -> vector<1x8x8xf32>
    "tpu.trace_stop"() : () -> ()
    %94 = tpu.reciprocal %92 {approx = true} : vector<1x8x1xf32> -> vector<1x8x1xf32>
    %95 = vector.broadcast %94 : vector<1x8x1xf32> to vector<1x8x8xf32>
    %96 = arith.mulf %93, %95 : vector<1x8x8xf32>
    %97 = vector.shape_cast %96 : vector<1x8x8xf32> to vector<8x8xf32>
    %c0_37 = arith.constant 0 : index
    %c24 = arith.constant 24 : index
    %98 = vector.load %arg11[%c0_37, %c24] : memref<8x32xf32, #tpu.memory_space<vmem>>, vector<8x8xf32>
    tpu.vector_store %arg11[%c0_37, %c24], %97 {strides = array<i32>} : memref<8x32xf32, #tpu.memory_space<vmem>>, vector<8x8xf32>,
    %c0_38 = arith.constant 0 : index
    %c0_39 = arith.constant 0 : index
    %99 = vector.load %arg11[%c0_38, %c0_39] : memref<8x32xf32, #tpu.memory_space<vmem>>, vector<8x32xf32>
    %c0_40 = arith.constant 0 : index
    %c0_41 = arith.constant 0 : index
    %100 = vector.load %arg8[%c0_40, %c0_41] : memref<32x32xf32, #tpu.memory_space<vmem>>, vector<32x32xf32>
    %cst_42 = arith.constant dense<0.000000e+00> : vector<8x32xf32>
    %101 = tpu.matmul %99, %100, %cst_42 {dimension_numbers = #tpu.dot_dimension_numbers<[1], [0], [0], [1], [0, 0, 1, 1], [], []>} : vector<8x32xf32>, vector<32x32xf32>, vector<8x32xf32> -> vector<8x32xf32>
    %c0_43 = arith.constant 0 : index
    %c0_44 = arith.constant 0 : index
    %102 = vector.load %arg9[%c0_43, %c0_44] : memref<1x32xf32, #tpu.memory_space<vmem>>, vector<1x32xf32>
    %103 = vector.broadcast %102 : vector<1x32xf32> to vector<8x32xf32>
    %104 = arith.addf %101, %103 : vector<8x32xf32>
    %105 = vector.shape_cast %104 : vector<8x32xf32> to vector<1x8x32xf32>
    %c0_45 = arith.constant 0 : index
    %c0_46 = arith.constant 0 : index
    %c0_47 = arith.constant 0 : index
    %106 = vector.load %arg10[%c0_45, %c0_46, %c0_47] : memref<1x8x32xf32, #tpu.memory_space<vmem>>, vector<1x8x32xf32>
    tpu.vector_store %arg10[%c0_45, %c0_46, %c0_47], %105 {strides = array<i32>} : memref<1x8x32xf32, #tpu.memory_space<vmem>>, vector<1x8x32xf32>,
    return
  }
  func.func @transform_0(%arg0: i32) -> (i32, i32, i32) {
    %c0_i32 = arith.constant 0 : i32
    %c0_i32_0 = arith.constant 0 : i32
    %c0_i32_1 = arith.constant 0 : i32
    return %arg0, %c0_i32, %c0_i32_0 : i32, i32, i32
  }
  func.func @transform_1(%arg0: i32) -> (i32, i32) {
    %c0_i32 = arith.constant 0 : i32
    %c0_i32_0 = arith.constant 0 : i32
    %c0_i32_1 = arith.constant 0 : i32
    return %c0_i32, %c0_i32_0 : i32, i32
  }
  func.func @transform_2(%arg0: i32) -> (i32, i32) {
    %c0_i32 = arith.constant 0 : i32
    %c0_i32_0 = arith.constant 0 : i32
    %c0_i32_1 = arith.constant 0 : i32
    return %c0_i32, %c0_i32_0 : i32, i32
  }
  func.func @transform_3(%arg0: i32) -> (i32, i32) {
    %c0_i32 = arith.constant 0 : i32
    %c0_i32_0 = arith.constant 0 : i32
    %c0_i32_1 = arith.constant 0 : i32
    return %c0_i32, %c0_i32_0 : i32, i32
  }
  func.func @transform_4(%arg0: i32) -> (i32, i32) {
    %c0_i32 = arith.constant 0 : i32
    %c0_i32_0 = arith.constant 0 : i32
    %c0_i32_1 = arith.constant 0 : i32
    return %c0_i32, %c0_i32_0 : i32, i32
  }
  func.func @transform_5(%arg0: i32) -> (i32, i32) {
    %c0_i32 = arith.constant 0 : i32
    %c0_i32_0 = arith.constant 0 : i32
    %c0_i32_1 = arith.constant 0 : i32
    return %c0_i32, %c0_i32_0 : i32, i32
  }
  func.func @transform_6(%arg0: i32) -> (i32, i32) {
    %c0_i32 = arith.constant 0 : i32
    %c0_i32_0 = arith.constant 0 : i32
    %c0_i32_1 = arith.constant 0 : i32
    return %c0_i32, %c0_i32_0 : i32, i32
  }
  func.func @transform_7(%arg0: i32) -> (i32, i32) {
    %c0_i32 = arith.constant 0 : i32
    %c0_i32_0 = arith.constant 0 : i32
    %c0_i32_1 = arith.constant 0 : i32
    return %c0_i32, %c0_i32_0 : i32, i32
  }
  func.func @transform_8(%arg0: i32) -> (i32, i32) {
    %c0_i32 = arith.constant 0 : i32
    %c0_i32_0 = arith.constant 0 : i32
    %c0_i32_1 = arith.constant 0 : i32
    return %c0_i32, %c0_i32_0 : i32, i32
  }
  func.func @transform_9(%arg0: i32) -> (i32, i32, i32) {
    %c0_i32 = arith.constant 0 : i32
    %c0_i32_0 = arith.constant 0 : i32
    %c0_i32_1 = arith.constant 0 : i32
    return %arg0, %c0_i32, %c0_i32_0 : i32, i32, i32
  }
}

module attributes {stable_mosaic.version = 11 : i64} {
  func.func @_attention_kernel(%arg0: i32, %arg1: memref<1x8x32xf32, #tpu.memory_space<vmem>>, %arg2: memref<32x32xf32, #tpu.memory_space<vmem>>, %arg3: memref<1x32xf32, #tpu.memory_space<vmem>>, %arg4: memref<32x32xf32, #tpu.memory_space<vmem>>, %arg5: memref<1x32xf32, #tpu.memory_space<vmem>>, %arg6: memref<32x32xf32, #tpu.memory_space<vmem>>, %arg7: memref<1x32xf32, #tpu.memory_space<vmem>>, %arg8: memref<32x32xf32, #tpu.memory_space<vmem>>, %arg9: memref<1x32xf32, #tpu.memory_space<vmem>>, %arg10: memref<1x8x32xf32, #tpu.memory_space<vmem>>, %arg11: memref<8x32xf32, #tpu.memory_space<vmem>>) attributes {dimension_semantics = [#tpu.dimension_semantics<parallel>], iteration_bounds = array<i64: 2>, scalar_prefetch = 0 : i64, scratch_operands = 1 : i64, tpu.core_type = #tpu.core_type<tc>, window_params = [{transform_indices = @transform_0, window_bounds = array<i64: 1, 8, 32>}, {pipeline_mode = #tpu.pipeline_mode<synchronous>, transform_indices = @transform_1, window_bounds = array<i64: 32, 32>}, {pipeline_mode = #tpu.pipeline_mode<synchronous>, transform_indices = @transform_2, window_bounds = array<i64: 1, 32>}, {pipeline_mode = #tpu.pipeline_mode<synchronous>, transform_indices = @transform_3, window_bounds = array<i64: 32, 32>}, {pipeline_mode = #tpu.pipeline_mode<synchronous>, transform_indices = @transform_4, window_bounds = array<i64: 1, 32>}, {pipeline_mode = #tpu.pipeline_mode<synchronous>, transform_indices = @transform_5, window_bounds = array<i64: 32, 32>}, {pipeline_mode = #tpu.pipeline_mode<synchronous>, transform_indices = @transform_6, window_bounds = array<i64: 1, 32>}, {pipeline_mode = #tpu.pipeline_mode<synchronous>, transform_indices = @transform_7, window_bounds = array<i64: 32, 32>}, {pipeline_mode = #tpu.pipeline_mode<synchronous>, transform_indices = @transform_8, window_bounds = array<i64: 1, 32>}, {transform_indices = @transform_9, window_bounds = array<i64: 1, 8, 32>}]} {
    %c0 = arith.constant 0 : index
    %c0_0 = arith.constant 0 : index
    %c0_1 = arith.constant 0 : index
    %0 = vector.load %arg1[%c0, %c0_0, %c0_1] : memref<1x8x32xf32, #tpu.memory_space<vmem>>, vector<1x8x32xf32>
    %1 = vector.shape_cast %0 : vector<1x8x32xf32> to vector<8x32xf32>
    %c0_2 = arith.constant 0 : index
    %c0_3 = arith.constant 0 : index
    %2 = vector.load %arg2[%c0_2, %c0_3] : memref<32x32xf32, #tpu.memory_space<vmem>>, vector<32x32xf32>
    %cst = arith.constant dense<0.000000e+00> : vector<8x32xf32>
    %3 = tpu.matmul %1, %2, %cst {dimension_numbers = #tpu.dot_dimension_numbers<[1], [0], [0], [1], [0, 0, 1, 1], [], []>} : vector<8x32xf32>, vector<32x32xf32>, vector<8x32xf32> -> vector<8x32xf32>
    %c0_4 = arith.constant 0 : index
    %c0_5 = arith.constant 0 : index
    %4 = vector.load %arg3[%c0_4, %c0_5] : memref<1x32xf32, #tpu.memory_space<vmem>>, vector<1x32xf32>
    %5 = vector.broadcast %4 : vector<1x32xf32> to vector<8x32xf32>
    %6 = arith.addf %3, %5 : vector<8x32xf32>
    %c0_6 = arith.constant 0 : index
    %c0_7 = arith.constant 0 : index
    %7 = vector.load %arg4[%c0_6, %c0_7] : memref<32x32xf32, #tpu.memory_space<vmem>>, vector<32x32xf32>
    %cst_8 = arith.constant dense<0.000000e+00> : vector<8x32xf32>
    %8 = tpu.matmul %1, %7, %cst_8 {dimension_numbers = #tpu.dot_dimension_numbers<[1], [0], [0], [1], [0, 0, 1, 1], [], []>} : vector<8x32xf32>, vector<32x32xf32>, vector<8x32xf32> -> vector<8x32xf32>
    %c0_9 = arith.constant 0 : index
    %c0_10 = arith.constant 0 : index
    %9 = vector.load %arg5[%c0_9, %c0_10] : memref<1x32xf32, #tpu.memory_space<vmem>>, vector<1x32xf32>
    %10 = vector.broadcast %9 : vector<1x32xf32> to vector<8x32xf32>
    %11 = arith.addf %8, %10 : vector<8x32xf32>
    %c0_11 = arith.constant 0 : index
    %c0_12 = arith.constant 0 : index
    %12 = vector.load %arg6[%c0_11, %c0_12] : memref<32x32xf32, #tpu.memory_space<vmem>>, vector<32x32xf32>
    %cst_13 = arith.constant dense<0.000000e+00> : vector<8x32xf32>
    %13 = tpu.matmul %1, %12, %cst_13 {dimension_numbers = #tpu.dot_dimension_numbers<[1], [0], [0], [1], [0, 0, 1, 1], [], []>} : vector<8x32xf32>, vector<32x32xf32>, vector<8x32xf32> -> vector<8x32xf32>
    %c0_14 = arith.constant 0 : index
    %c0_15 = arith.constant 0 : index
    %14 = vector.load %arg7[%c0_14, %c0_15] : memref<1x32xf32, #tpu.memory_space<vmem>>, vector<1x32xf32>
    %15 = vector.broadcast %14 : vector<1x32xf32> to vector<8x32xf32>
    %16 = arith.addf %13, %15 : vector<8x32xf32>
    %cst_16 = arith.constant 0.353553385 : f32
    %17 = vector.broadcast %cst_16 : f32 to vector<8x32xf32>
    %18 = arith.mulf %6, %17 : vector<8x32xf32>
    %19 = vector.extract_strided_slice %18 {offsets = [0, 0], sizes = [8, 8], strides = [1, 1]} : vector<8x32xf32> to vector<8x8xf32>
    %20 = vector.shape_cast %19 : vector<8x8xf32> to vector<1x8x8xf32>
    %21 = vector.extract_strided_slice %11 {offsets = [0, 0], sizes = [8, 8], strides = [1, 1]} : vector<8x32xf32> to vector<8x8xf32>
    %22 = vector.shape_cast %21 : vector<8x8xf32> to vector<1x8x8xf32>
    %23 = vector.extract_strided_slice %16 {offsets = [0, 0], sizes = [8, 8], strides = [1, 1]} : vector<8x32xf32> to vector<8x8xf32>
    %24 = vector.shape_cast %23 : vector<8x8xf32> to vector<1x8x8xf32>
    "tpu.trace_start"() <{level = 10 : i32, message = "bnd,bmd->bnm"}> : () -> ()
    %cst_17 = arith.constant dense<0.000000e+00> : vector<1x8x8xf32>
    %25 = tpu.matmul %20, %22, %cst_17 {dimension_numbers = #tpu.dot_dimension_numbers<[2], [2], [1], [1], [0, 0, 0, 1, 1, 1], [0], [0]>} : vector<1x8x8xf32>, vector<1x8x8xf32>, vector<1x8x8xf32> -> vector<1x8x8xf32>
    "tpu.trace_stop"() : () -> ()
    %cst_18 = arith.constant dense<0xFF800000> : vector<1x8xf32>
    %26 = vector.multi_reduction <maximumf>, %25, %cst_18 [2] : vector<1x8x8xf32> to vector<1x8xf32>
    %27 = vector.shape_cast %26 : vector<1x8xf32> to vector<1x8x1xf32>
    %28 = vector.broadcast %27 : vector<1x8x1xf32> to vector<1x8x8xf32>
    %29 = arith.subf %25, %28 : vector<1x8x8xf32>
    %30 = math.exp %29 : vector<1x8x8xf32>
    %cst_19 = arith.constant dense<0.000000e+00> : vector<1x8xf32>
    %31 = vector.multi_reduction <add>, %30, %cst_19 [2] : vector<1x8x8xf32> to vector<1x8xf32>
    %32 = vector.shape_cast %31 : vector<1x8xf32> to vector<1x8x1xf32>
    "tpu.trace_start"() <{level = 10 : i32, message = "bnm,bmd->bnd"}> : () -> ()
    %cst_20 = arith.constant dense<0.000000e+00> : vector<1x8x8xf32>
    %33 = tpu.matmul %30, %24, %cst_20 {dimension_numbers = #tpu.dot_dimension_numbers<[2], [1], [1], [2], [0, 0, 0, 1, 1, 2], [0], [0]>} : vector<1x8x8xf32>, vector<1x8x8xf32>, vector<1x8x8xf32> -> vector<1x8x8xf32>
    "tpu.trace_stop"() : () -> ()
    %34 = tpu.reciprocal %32 {approx = true} : vector<1x8x1xf32> -> vector<1x8x1xf32>
    %35 = vector.broadcast %34 : vector<1x8x1xf32> to vector<1x8x8xf32>
    %36 = arith.mulf %33, %35 : vector<1x8x8xf32>
    %37 = vector.shape_cast %36 : vector<1x8x8xf32> to vector<8x8xf32>
    %c0_21 = arith.constant 0 : index
    %c0_22 = arith.constant 0 : index
    %38 = vector.load %arg11[%c0_21, %c0_22] : memref<8x32xf32, #tpu.memory_space<vmem>>, vector<8x8xf32>
    tpu.vector_store %arg11[%c0_21, %c0_22], %37 {strides = array<i32>} : memref<8x32xf32, #tpu.memory_space<vmem>>, vector<8x8xf32>,
    %39 = vector.extract_strided_slice %18 {offsets = [0, 8], sizes = [8, 8], strides = [1, 1]} : vector<8x32xf32> to vector<8x8xf32>
    %40 = vector.shape_cast %39 : vector<8x8xf32> to vector<1x8x8xf32>
    %41 = vector.extract_strided_slice %11 {offsets = [0, 8], sizes = [8, 8], strides = [1, 1]} : vector<8x32xf32> to vector<8x8xf32>
    %42 = vector.shape_cast %41 : vector<8x8xf32> to vector<1x8x8xf32>
    %43 = vector.extract_strided_slice %16 {offsets = [0, 8], sizes = [8, 8], strides = [1, 1]} : vector<8x32xf32> to vector<8x8xf32>
    %44 = vector.shape_cast %43 : vector<8x8xf32> to vector<1x8x8xf32>
    "tpu.trace_start"() <{level = 10 : i32, message = "bnd,bmd->bnm"}> : () -> ()
    %cst_23 = arith.constant dense<0.000000e+00> : vector<1x8x8xf32>
    %45 = tpu.matmul %40, %42, %cst_23 {dimension_numbers = #tpu.dot_dimension_numbers<[2], [2], [1], [1], [0, 0, 0, 1, 1, 1], [0], [0]>} : vector<1x8x8xf32>, vector<1x8x8xf32>, vector<1x8x8xf32> -> vector<1x8x8xf32>
    "tpu.trace_stop"() : () -> ()
    %cst_24 = arith.constant dense<0xFF800000> : vector<1x8xf32>
    %46 = vector.multi_reduction <maximumf>, %45, %cst_24 [2] : vector<1x8x8xf32> to vector<1x8xf32>
    %47 = vector.shape_cast %46 : vector<1x8xf32> to vector<1x8x1xf32>
    %48 = vector.broadcast %47 : vector<1x8x1xf32> to vector<1x8x8xf32>
    %49 = arith.subf %45, %48 : vector<1x8x8xf32>
    %50 = math.exp %49 : vector<1x8x8xf32>
    %cst_25 = arith.constant dense<0.000000e+00> : vector<1x8xf32>
    %51 = vector.multi_reduction <add>, %50, %cst_25 [2] : vector<1x8x8xf32> to vector<1x8xf32>
    %52 = vector.shape_cast %51 : vector<1x8xf32> to vector<1x8x1xf32>
    "tpu.trace_start"() <{level = 10 : i32, message = "bnm,bmd->bnd"}> : () -> ()
    %cst_26 = arith.constant dense<0.000000e+00> : vector<1x8x8xf32>
    %53 = tpu.matmul %50, %44, %cst_26 {dimension_numbers = #tpu.dot_dimension_numbers<[2], [1], [1], [2], [0, 0, 0, 1, 1, 2], [0], [0]>} : vector<1x8x8xf32>, vector<1x8x8xf32>, vector<1x8x8xf32> -> vector<1x8x8xf32>
    "tpu.trace_stop"() : () -> ()
    %54 = tpu.reciprocal %52 {approx = true} : vector<1x8x1xf32> -> vector<1x8x1xf32>
    %55 = vector.broadcast %54 : vector<1x8x1xf32> to vector<1x8x8xf32>
    %56 = arith.mulf %53, %55 : vector<1x8x8xf32>
    %57 = vector.shape_cast %56 : vector<1x8x8xf32> to vector<8x8xf32>
    %c0_27 = arith.constant 0 : index
    %c8 = arith.constant 8 : index
    %58 = vector.load %arg11[%c0_27, %c8] : memref<8x32xf32, #tpu.memory_space<vmem>>, vector<8x8xf32>
    tpu.vector_store %arg11[%c0_27, %c8], %57 {strides = array<i32>} : memref<8x32xf32, #tpu.memory_space<vmem>>, vector<8x8xf32>,
    %59 = vector.extract_strided_slice %18 {offsets = [0, 16], sizes = [8, 8], strides = [1, 1]} : vector<8x32xf32> to vector<8x8xf32>
    %60 = vector.shape_cast %59 : vector<8x8xf32> to vector<1x8x8xf32>
    %61 = vector.extract_strided_slice %11 {offsets = [0, 16], sizes = [8, 8], strides = [1, 1]} : vector<8x32xf32> to vector<8x8xf32>
    %62 = vector.shape_cast %61 : vector<8x8xf32> to vector<1x8x8xf32>
    %63 = vector.extract_strided_slice %16 {offsets = [0, 16], sizes = [8, 8], strides = [1, 1]} : vector<8x32xf32> to vector<8x8xf32>
    %64 = vector.shape_cast %63 : vector<8x8xf32> to vector<1x8x8xf32>
    "tpu.trace_start"() <{level = 10 : i32, message = "bnd,bmd->bnm"}> : () -> ()
    %cst_28 = arith.constant dense<0.000000e+00> : vector<1x8x8xf32>
    %65 = tpu.matmul %60, %62, %cst_28 {dimension_numbers = #tpu.dot_dimension_numbers<[2], [2], [1], [1], [0, 0, 0, 1, 1, 1], [0], [0]>} : vector<1x8x8xf32>, vector<1x8x8xf32>, vector<1x8x8xf32> -> vector<1x8x8xf32>
    "tpu.trace_stop"() : () -> ()
    %cst_29 = arith.constant dense<0xFF800000> : vector<1x8xf32>
    %66 = vector.multi_reduction <maximumf>, %65, %cst_29 [2] : vector<1x8x8xf32> to vector<1x8xf32>
    %67 = vector.shape_cast %66 : vector<1x8xf32> to vector<1x8x1xf32>
    %68 = vector.broadcast %67 : vector<1x8x1xf32> to vector<1x8x8xf32>
    %69 = arith.subf %65, %68 : vector<1x8x8xf32>
    %70 = math.exp %69 : vector<1x8x8xf32>
    %cst_30 = arith.constant dense<0.000000e+00> : vector<1x8xf32>
    %71 = vector.multi_reduction <add>, %70, %cst_30 [2] : vector<1x8x8xf32> to vector<1x8xf32>
    %72 = vector.shape_cast %71 : vector<1x8xf32> to vector<1x8x1xf32>
    "tpu.trace_start"() <{level = 10 : i32, message = "bnm,bmd->bnd"}> : () -> ()
    %cst_31 = arith.constant dense<0.000000e+00> : vector<1x8x8xf32>
    %73 = tpu.matmul %70, %64, %cst_31 {dimension_numbers = #tpu.dot_dimension_numbers<[2], [1], [1], [2], [0, 0, 0, 1, 1, 2], [0], [0]>} : vector<1x8x8xf32>, vector<1x8x8xf32>, vector<1x8x8xf32> -> vector<1x8x8xf32>
    "tpu.trace_stop"() : () -> ()
    %74 = tpu.reciprocal %72 {approx = true} : vector<1x8x1xf32> -> vector<1x8x1xf32>
    %75 = vector.broadcast %74 : vector<1x8x1xf32> to vector<1x8x8xf32>
    %76 = arith.mulf %73, %75 : vector<1x8x8xf32>
    %77 = vector.shape_cast %76 : vector<1x8x8xf32> to vector<8x8xf32>
    %c0_32 = arith.constant 0 : index
    %c16 = arith.constant 16 : index
    %78 = vector.load %arg11[%c0_32, %c16] : memref<8x32xf32, #tpu.memory_space<vmem>>, vector<8x8xf32>
    tpu.vector_store %arg11[%c0_32, %c16], %77 {strides = array<i32>} : memref<8x32xf32, #tpu.memory_space<vmem>>, vector<8x8xf32>,
    %79 = vector.extract_strided_slice %18 {offsets = [0, 24], sizes = [8, 8], strides = [1, 1]} : vector<8x32xf32> to vector<8x8xf32>
    %80 = vector.shape_cast %79 : vector<8x8xf32> to vector<1x8x8xf32>
    %81 = vector.extract_strided_slice %11 {offsets = [0, 24], sizes = [8, 8], strides = [1, 1]} : vector<8x32xf32> to vector<8x8xf32>
    %82 = vector.shape_cast %81 : vector<8x8xf32> to vector<1x8x8xf32>
    %83 = vector.extract_strided_slice %16 {offsets = [0, 24], sizes = [8, 8], strides = [1, 1]} : vector<8x32xf32> to vector<8x8xf32>
    %84 = vector.shape_cast %83 : vector<8x8xf32> to vector<1x8x8xf32>
    "tpu.trace_start"() <{level = 10 : i32, message = "bnd,bmd->bnm"}> : () -> ()
    %cst_33 = arith.constant dense<0.000000e+00> : vector<1x8x8xf32>
    %85 = tpu.matmul %80, %82, %cst_33 {dimension_numbers = #tpu.dot_dimension_numbers<[2], [2], [1], [1], [0, 0, 0, 1, 1, 1], [0], [0]>} : vector<1x8x8xf32>, vector<1x8x8xf32>, vector<1x8x8xf32> -> vector<1x8x8xf32>
    "tpu.trace_stop"() : () -> ()
    %cst_34 = arith.constant dense<0xFF800000> : vector<1x8xf32>
    %86 = vector.multi_reduction <maximumf>, %85, %cst_34 [2] : vector<1x8x8xf32> to vector<1x8xf32>
    %87 = vector.shape_cast %86 : vector<1x8xf32> to vector<1x8x1xf32>
    %88 = vector.broadcast %87 : vector<1x8x1xf32> to vector<1x8x8xf32>
    %89 = arith.subf %85, %88 : vector<1x8x8xf32>
    %90 = math.exp %89 : vector<1x8x8xf32>
    %cst_35 = arith.constant dense<0.000000e+00> : vector<1x8xf32>
    %91 = vector.multi_reduction <add>, %90, %cst_35 [2] : vector<1x8x8xf32> to vector<1x8xf32>
    %92 = vector.shape_cast %91 : vector<1x8xf32> to vector<1x8x1xf32>
    "tpu.trace_start"() <{level = 10 : i32, message = "bnm,bmd->bnd"}> : () -> ()
    %cst_36 = arith.constant dense<0.000000e+00> : vector<1x8x8xf32>
    %93 = tpu.matmul %90, %84, %cst_36 {dimension_numbers = #tpu.dot_dimension_numbers<[2], [1], [1], [2], [0, 0, 0, 1, 1, 2], [0], [0]>} : vector<1x8x8xf32>, vector<1x8x8xf32>, vector<1x8x8xf32> -> vector<1x8x8xf32>
    "tpu.trace_stop"() : () -> ()
    %94 = tpu.reciprocal %92 {approx = true} : vector<1x8x1xf32> -> vector<1x8x1xf32>
    %95 = vector.broadcast %94 : vector<1x8x1xf32> to vector<1x8x8xf32>
    %96 = arith.mulf %93, %95 : vector<1x8x8xf32>
    %97 = vector.shape_cast %96 : vector<1x8x8xf32> to vector<8x8xf32>
    %c0_37 = arith.constant 0 : index
    %c24 = arith.constant 24 : index
    %98 = vector.load %arg11[%c0_37, %c24] : memref<8x32xf32, #tpu.memory_space<vmem>>, vector<8x8xf32>
    tpu.vector_store %arg11[%c0_37, %c24], %97 {strides = array<i32>} : memref<8x32xf32, #tpu.memory_space<vmem>>, vector<8x8xf32>,
    %c0_38 = arith.constant 0 : index
    %c0_39 = arith.constant 0 : index
    %99 = vector.load %arg11[%c0_38, %c0_39] : memref<8x32xf32, #tpu.memory_space<vmem>>, vector<8x32xf32>
    %c0_40 = arith.constant 0 : index
    %c0_41 = arith.constant 0 : index
    %100 = vector.load %arg8[%c0_40, %c0_41] : memref<32x32xf32, #tpu.memory_space<vmem>>, vector<32x32xf32>
    %cst_42 = arith.constant dense<0.000000e+00> : vector<8x32xf32>
    %101 = tpu.matmul %99, %100, %cst_42 {dimension_numbers = #tpu.dot_dimension_numbers<[1], [0], [0], [1], [0, 0, 1, 1], [], []>} : vector<8x32xf32>, vector<32x32xf32>, vector<8x32xf32> -> vector<8x32xf32>
    %c0_43 = arith.constant 0 : index
    %c0_44 = arith.constant 0 : index
    %102 = vector.load %arg9[%c0_43, %c0_44] : memref<1x32xf32, #tpu.memory_space<vmem>>, vector<1x32xf32>
    %103 = vector.broadcast %102 : vector<1x32xf32> to vector<8x32xf32>
    %104 = arith.addf %101, %103 : vector<8x32xf32>
    %105 = vector.shape_cast %104 : vector<8x32xf32> to vector<1x8x32xf32>
    %c0_45 = arith.constant 0 : index
    %c0_46 = arith.constant 0 : index
    %c0_47 = arith.constant 0 : index
    %106 = vector.load %arg10[%c0_45, %c0_46, %c0_47] : memref<1x8x32xf32, #tpu.memory_space<vmem>>, vector<1x8x32xf32>
    tpu.vector_store %arg10[%c0_45, %c0_46, %c0_47], %105 {strides = array<i32>} : memref<1x8x32xf32, #tpu.memory_space<vmem>>, vector<1x8x32xf32>,
    return
  }
  func.func @transform_0(%arg0: i32) -> (i32, i32, i32) {
    %c0_i32 = arith.constant 0 : i32
    %c0_i32_0 = arith.constant 0 : i32
    %c0_i32_1 = arith.constant 0 : i32
    return %arg0, %c0_i32, %c0_i32_0 : i32, i32, i32
  }
  func.func @transform_1(%arg0: i32) -> (i32, i32) {
    %c0_i32 = arith.constant 0 : i32
    %c0_i32_0 = arith.constant 0 : i32
    %c0_i32_1 = arith.constant 0 : i32
    return %c0_i32, %c0_i32_0 : i32, i32
  }
  func.func @transform_2(%arg0: i32) -> (i32, i32) {
    %c0_i32 = arith.constant 0 : i32
    %c0_i32_0 = arith.constant 0 : i32
    %c0_i32_1 = arith.constant 0 : i32
    return %c0_i32, %c0_i32_0 : i32, i32
  }
  func.func @transform_3(%arg0: i32) -> (i32, i32) {
    %c0_i32 = arith.constant 0 : i32
    %c0_i32_0 = arith.constant 0 : i32
    %c0_i32_1 = arith.constant 0 : i32
    return %c0_i32, %c0_i32_0 : i32, i32
  }
  func.func @transform_4(%arg0: i32) -> (i32, i32) {
    %c0_i32 = arith.constant 0 : i32
    %c0_i32_0 = arith.constant 0 : i32
    %c0_i32_1 = arith.constant 0 : i32
    return %c0_i32, %c0_i32_0 : i32, i32
  }
  func.func @transform_5(%arg0: i32) -> (i32, i32) {
    %c0_i32 = arith.constant 0 : i32
    %c0_i32_0 = arith.constant 0 : i32
    %c0_i32_1 = arith.constant 0 : i32
    return %c0_i32, %c0_i32_0 : i32, i32
  }
  func.func @transform_6(%arg0: i32) -> (i32, i32) {
    %c0_i32 = arith.constant 0 : i32
    %c0_i32_0 = arith.constant 0 : i32
    %c0_i32_1 = arith.constant 0 : i32
    return %c0_i32, %c0_i32_0 : i32, i32
  }
  func.func @transform_7(%arg0: i32) -> (i32, i32) {
    %c0_i32 = arith.constant 0 : i32
    %c0_i32_0 = arith.constant 0 : i32
    %c0_i32_1 = arith.constant 0 : i32
    return %c0_i32, %c0_i32_0 : i32, i32
  }
  func.func @transform_8(%arg0: i32) -> (i32, i32) {
    %c0_i32 = arith.constant 0 : i32
    %c0_i32_0 = arith.constant 0 : i32
    %c0_i32_1 = arith.constant 0 : i32
    return %c0_i32, %c0_i32_0 : i32, i32
  }
  func.func @transform_9(%arg0: i32) -> (i32, i32, i32) {
    %c0_i32 = arith.constant 0 : i32
    %c0_i32_0 = arith.constant 0 : i32
    %c0_i32_1 = arith.constant 0 : i32
    return %arg0, %c0_i32, %c0_i32_0 : i32, i32, i32
  }
}

</mosaic_0001>

<bundles_post_ra>
// kernel: tpu_custom_call.1
= control target key start
LH: loop header
LB: loop body
LE: loop exit
PB: predicated region body
PF: predicated region fallthrough
CT: control target
= control target key end

     0   :  { %s1596_s0 = inlined_call_operand.hbm [shape: f32[2,8,32], index: 0, kind: input, shape index: {}]   ;;  %s1597_s1 = inlined_call_operand.hbm [shape: f32[32,32], index: 1, kind: input, shape index: {}]   ;;  %s1598_s2 = inlined_call_operand.vmem [shape: f32[1,32], index: 2, kind: input, shape index: {}]   ;;  %s1599_s3 = inlined_call_operand.hbm [shape: f32[32,32], index: 3, kind: input, shape index: {}]   ;;  %s1600_s4 = inlined_call_operand.vmem [shape: f32[1,32], index: 4, kind: input, shape index: {}]   ;;  %s1601_s5 = inlined_call_operand.hbm [shape: f32[32,32], index: 5, kind: input, shape index: {}]   ;;  %s1602_s6 = inlined_call_operand.vmem [shape: f32[1,32], index: 6, kind: input, shape index: {}]   ;;  %s1603_s7 = inlined_call_operand.hbm [shape: f32[32,32], index: 7, kind: input, shape index: {}]   ;;  %s1604_s8 = inlined_call_operand.vmem [shape: f32[1,32], index: 8, kind: input, shape index: {}]   ;;  %s1605_s9 = inlined_call_operand.hbm [shape: f32[2,8,32], index: 9, kind: output, shape index: {}]  }
   0x1   :  { %1606 = sst [smem:[#allocation17_spill]] %s1597_s1 }
   0x2   :  { %1607 = sst [smem:[#allocation18_spill]] %s1599_s3 }
   0x3   :  { %1608 = sst [smem:[#allocation19_spill]] %s1601_s5 }
   0x4   :  { %1609 = sst [smem:[#allocation20_spill]] %s1603_s7 }
   0x5   :  { %14 = vsyncpa [#allocation4], 0 }
   0x6   :  { %16 = vsyncpa [#allocation4 + $0x1], 0 }
   0x7   :  { %17 = vsyncpa [#allocation7], 0 }
   0x8   :  { %18 = vsyncpa [#allocation10], 0 }
   0x9   :  { %19 = vsyncpa [#allocation5], 0 }
   0xa   :  { %21 = vsyncpa [#allocation5 + $0x1], 0  ;;  %s1378_s30 = smov 0   ;;  %s1380_s10 = smov 0  }
   0xb   :  { %s1382_s11 = smov 0   ;;  %s1384_s12 = smov 0  }
   0xc LB: > { %s1610_s1 = sld [smem:[#allocation17_spill]]  ;;  %s1402_s16 = sadd.s32 4294967295, %s1314_s12   ;;  %s1314_s12 = sphi %s1384_s12, %s1625_s12   ;;  %s1310_s11 = sphi %s1382_s11, %s1624_s11   ;;  %s1306_s10 = sphi %s1380_s10, %s1623_s10   ;;  %s1302_s30 = sphi %s1378_s30, %s1622_s30  }
   0xd   : > { %p940_p0 = scmp.ge.s32.totalorder %s1314_s12, 1  ;;  %p48_p1 = scmp.eq.s32.totalorder %s1402_s16, 0 }
   0xe   : > { %p252_p2 = scmp.lt.s32.totalorder %s1314_s12, 3  ;;  %s1316_s18 = smov [#allocation6]  }
   0xf   : > { %s265_s19 = sshll.u32 %s1316_s18, 4  ;;  %s1612_s5 = sld [smem:[#allocation19_spill]]  ;;  %s266_s19 = int_to_ptr.vmem [resolvable:$true] %s265_s19 }
  0x10   : > { %p1407_p3 = pnand %p940_p0, %p252_p2  ;;  %s1614_s3 = sld [smem:[#allocation18_spill]] }
  0x11   : > { %s1317_s27 = smov [#allocation9]   ;;  %s1318_s29 = smov 128  }
  0x12   : > { %s263_s15 = sshll.u32 %s1610_s1, 4  ;;  %p995_p4 = pneg %p1407_p3  ;;  %s264_s15 = int_to_ptr.hbm [resolvable:$true] %s263_s15 }
  0x13   : > { %s299_s28 = sshll.u32 %s1317_s27, 4  ;;  %s1319_s13 = smov 8   ;;  %s300_s28 = int_to_ptr.vmem [resolvable:$true] %s299_s28 }
  0x14   : > { %p1419_p6 = pnand %p995_p4, %p48_p1  ;;  %s1615_s7 = sld [smem:[#allocation20_spill]] }
  0x15   : > { %s297_s22 = sshll.u32 %s1612_s5, 4  ;;  %s1320_s21 = smov [#allocation8]   ;;  %s298_s22 = int_to_ptr.hbm [resolvable:$true] %s297_s22 }
  0x16   : > { %s280_s26 = sshll.u32 %s1614_s3, 4  ;;  %s282_s24 = sshll.u32 %s1320_s21, 4  ;;  %s281_s26 = int_to_ptr.hbm [resolvable:$true] %s280_s26  ;;  %s283_s24 = int_to_ptr.vmem [resolvable:$true] %s282_s24 }
  0x17   : > { %998 = dma.hbm_to_vmem [thread:$0]  (!%p1419_p6), %s264_s15, 512, %s266_s19, [#allocation7], %s1318_s29, %s1318_s29, %s1319_s13  }
  0x18   : > { %1004 = dma.hbm_to_vmem [thread:$0]  (!%p1419_p6), %s298_s22, 512, %s300_s28, [#allocation10], %s1318_s29, %s1318_s29, %s1319_s13  }
  0x19   : > { %1001 = dma.hbm_to_vmem [thread:$0]  (!%p1419_p6), %s281_s26, 512, %s283_s24, [#allocation7], %s1318_s29, %s1318_s29, %s1319_s13  }
  0x1a   : > { %s314_s20 = sshll.u32 %s1615_s7, 4  ;;  %s1321_s15 = smov [#allocation11]   ;;  %s315_s20 = int_to_ptr.hbm [resolvable:$true] %s314_s20 }
  0x1b   : > { %s316_s19 = sshll.u32 %s1321_s15, 4  ;;  %s939_s22 = sadd.s32 4294967294, %s1314_s12   ;;  %s317_s19 = int_to_ptr.vmem [resolvable:$true] %s316_s19 }
  0x1c   : > { %1007 = dma.hbm_to_vmem [thread:$0]  (!%p1419_p6), %s315_s20, 512, %s317_s19, [#allocation10], %s1318_s29, %s1318_s29, %s1319_s13  }
  0x1d   : > { %s1439_s25 = sadd.s32 1, %s1314_s12   ;;  %s34_s28 = sadd.s32 1, %s1310_s11 }
  0x1e   : > { %s31_s27 = ssub.s32 %s1314_s12, %s1439_s25  ;;  %p41_p8 = scmp.ne.s32.totalorder %s1310_s11, %s1306_s10 }
  0x1f   : > { %p32_p7 = scmp.eq.s32.totalorder %s31_s27, 0  ;;  %p42_p9 = scmp.eq.s32.totalorder %s1314_s12, 0 }
  0x20   : > { %p47_p10 = scmp.ne.s32.totalorder %s1306_s10, %s1302_s30  ;;  %p239_p13 = scmp.eq.s32.totalorder %s1402_s16, 1 }
  0x21   : > { %s1450_s26 = scalar_select %p32_p7, %s1310_s11, %s34_s28  }
  0x22   : > { %p1452_p11 = por %p42_p9, %p41_p8  ;;  %p1458_p12 = por %p48_p1, %p47_p10 }
  0x23   : > { %p245_p0 = scmp.eq.s32.totalorder %s939_s22, 1  ;;  %p1020_p2 = scmp.lt.s32.totalorder %s1314_s12, 2 }
  0x24   : > { %s333_s29 = sand.u32 1, %s1310_s11   ;;  %p1465_p4 = por %p239_p13, %p41_p8 }
  0x25   : > { %p1469_p6 = por %p245_p0, %p47_p10  ;;  %s946_s20 = sshll.u32 %s333_s29, 3 }
  0x26   : > { %s947_s21 = sshll.u32 %s1314_s12, 3  ;;  %s337_s27 = scalar_lea.vmem [#allocation3], %s946_s20 }
  0x27   : > { %s341_s19 = scalar_lea.hbm %s1596_s0, %s947_s21  ;;  %s345_s28 = sshll.u32 %s337_s27, 4  ;;  %s346_s28 = int_to_ptr.vmem [resolvable:$true] %s345_s28 }
  0x28   : > { %s343_s1 = sshll.u32 %s341_s19, 4  ;;  %p1479_p7 = pnand %p1020_p2, %p1452_p11  ;;  %s344_s1 = int_to_ptr.hbm [resolvable:$true] %s343_s1 }
  0x29   : > { %s334_s3 = scalar_lea.sflag [#allocation4], %s333_s29  ;;  %s1210_s5 = sshra.s32 %s344_s1, 4  ;;  %s1211_s5 = int_to_ptr.hbm [resolvable:$true] %s1210_s5 }
  0x2a   : > { %s1212_s7 = scalar_lea.hbm %s1211_s5, 8  ;;  %p1214_p9 = pneg %p1479_p7 }
  0x2b   : > { %p1213_p8 = scmp.ne.s32.totalorder %s1211_s5, %s1212_s7  ;;  %s1217_s24 = scalar_lea.hbm %s1596_s0, 16 }
  0x2c   : > { %p1218_p11 = scmp.lt.s32.totalorder %s1211_s5, %s1596_s0  ;;  %p1219_p0 = scmp.lt.s32.totalorder %s1217_s24, %s1212_s7 }
  0x2d   : > { %p1215_p10 = pnand %p1214_p9, %p1213_p8 }
  0x2e   : > { %p1220_p2 = por %p1219_p0, %p1218_p11 }
  0x2f   : > { %p1216_p13 = pneg %p1215_p10 }
  0x31   : > { %p1221_p5 = pnand %p1220_p2, %p1216_p13 }
  0x33   : > { %1224 = shalt.err (!%p1221_p5)
}
  0x34   : > { %1011 = dma.hbm_to_vmem [thread:$0]  (!%p1479_p7), %s344_s1, 128, %s346_s28, %s334_s3  }
  0x35   : > { %354 = sbr.rel (%p1407_p3) target bundleno = 985 (0x3d9), region = 56  ;;  %s1496_s29 = sand.u32 (!%p1407_p3), 1, %s1306_s10  }
  0x36   : > { %s949_s19 = sshll.u32 (!%p1407_p3), %s1496_s29, 3  ;;  %s357_s27 = scalar_lea.sflag (!%p1407_p3), [#allocation4], %s1496_s29 }
  0x37   : > { %s360_s5 = scalar_lea.vmem (!%p1407_p3), [#allocation3], %s949_s19 }
  0x3a   : > { %1285 = dma.done.wait (%p1458_p12), %s357_s27, 128  }
  0x3b   : > { %1287 = vsyncadd (%p1458_p12), %s357_s27, 4294967168 }
  0x3c   : > { %1289 = dma.done.wait (%p48_p1), [#allocation7], 1024  }
  0x3d   : > { %1291 = vsyncadd (%p48_p1), [#allocation7], 4294966272 }
  0x3e   : > { %1293 = dma.done.wait (%p48_p1), [#allocation10], 1024  }
  0x3f   : > { %1295 = vsyncadd (%p48_p1), [#allocation10], 4294966272  ;;  %v452_v0 = vld [vmem:[#allocation8 + $0x18] sm:$0xff]  ;;  %v451_v2 = vld [vmem:[#allocation8 + $0x10] sm:$0xff]  ;;  %vm425_vm0 = vcmask 261120   ;;  %vm506_vm1 = vcmask 64512  }
  0x40   : > { %v420_v1 = vld [vmem:[#allocation6 + $0x18] sm:$0xff]  ;;  %469 = vmatpush.msra.mxu1 %v452_v0  ;;  %v419_v3 = vld [vmem:[#allocation6 + $0x10] sm:$0xff]  ;;  %v450_v4 = vld [vmem:[#allocation8 + $0x8] sm:$0xff]  ;;  %s1322_s23 = smov 104   ;;  %s1323_s28 = smov 120   ;;  %vm638_vm2 = vcmask 130112  }
  0x41   : > { %441 = vmatpush.msra.mxu0 %v420_v1  ;;  %v418_v5 = vld [vmem:[#allocation6 + $0x8] sm:$0xff]  ;;  %v449_v6 = vld [vmem:[#allocation8] sm:$0xff]  ;;  %v416_v8 = vld [vmem:[%s360_s5] sm:$0xff]  ;;  %s1324_s22 = smov 112   ;;  %s1325_s24 = smov 8   ;;  %vm709_vm3 = vcmask 195712  }
  0x42   : > { %470 = vmatpush.msra.mxu1 %v451_v2  ;;  %v417_v7 = vld [vmem:[#allocation6] sm:$0xff]  ;;  %v1070_v9 = vld [vmem:[%s1600_s4] ss:$0 sm:$0xff]  ;;  %v480_v16 = vld [vmem:[#allocation9 + $0x18] sm:$0xff]  ;;  %s1326_s15 = smov 24   ;;  %s1327_s14 = smov 16  }
  0x43   : > { %442 = vmatpush.msra.mxu0 %v419_v3  ;;  %v1071_v10 = vld [vmem:[%s1598_s2] ss:$0 sm:$0xff]  ;;  %v479_v17 = vld [vmem:[#allocation9 + $0x10] sm:$0xff]  ;;  %497 = vmatpush.msra.mxu2 %v480_v16  ;;  %v477_v19 = vld [vmem:[#allocation9] sm:$0xff]  ;;  %vm780_vm4 = vcmask 261312   ;;  %s972_s27 = sshll.u32 %s1402_s16, 3 }
  0x44   : > { %471 = vmatpush.msra.mxu1 %v450_v4  ;;  %v478_v18 = vld [vmem:[#allocation9 + $0x8] sm:$0xff]  ;;  %s826_s3 = scalar_lea.hbm %s1605_s9, %s972_s27  ;;  %s816_s16 = scalar_lea.sflag [#allocation5], %s1496_s29 }
  0x45   : > { %443 = vmatpush.msra.mxu0 %v418_v5  ;;  %498 = vmatpush.msra.mxu2 %v479_v17  ;;  %v1072_v28 = vld [vmem:[%s1602_s6] ss:$0 sm:$0xff] }
  0x46   : > { %472 = vmatpush.msra.mxu1 %v449_v6 }
  0x47   : > { %444 = vmatpush.msra.mxu0 %v417_v7  ;;  %956 = vmatmul.msk.f32.vlgmr.msra.gmra.mxu1 %vm425_vm0, %v416_v8 }
  0x48   : > { %955 = vmatmul.msk.f32.vlgmr.msra.gmra.mxu0 %vm425_vm0, %v416_v8  ;;  %499 = vmatpush.msra.mxu2 %v478_v18 }
  0x4a   : > { %500 = vmatpush.msra.mxu2 %v477_v19 }
  0x4b   : > { %957 = vmatmul.msk.f32.vlgmr.msra.gmra.mxu2 %vm425_vm0, %v416_v8 }
  0xc4   : > { %v474_v11 = vpop.f32.mrf.mxu1 }
  0xc5   : > { %v446_v12 = vpop.f32.mrf.mxu0  ;;  %v475_v13 = vadd.f32 %v1070_v9, %v474_v11 }
  0xc6   : > { %v447_v14 = vadd.f32 %v1071_v10, %v446_v12  ;;  %v786_v12 = vld [vmem:[#allocation11 + $0x18] sm:$0xff] }
  0xc7   : > { %713 = vrot.lane.b32.xlu2 %v475_v13, %s1322_s23  ;;  %570 = vrot.lane.b32.xlu1 %v475_v13, %s1323_s28 }
  0xc8   : > { %v505_v15 = vmul.f32 0.35355338, %v447_v14  ;;  %642 = vrot.lane.b32.xlu0 %v475_v13, %s1324_s22  ;;  %958 = vmatpush.xpose.msk.msra.mxu3 %vm506_vm1, %v475_v13  ;;  %v785_v13 = vld [vmem:[#allocation11 + $0x10] sm:$0xff]  ;;  %v784_v14 = vld [vmem:[#allocation11 + $0x8] sm:$0xff] }
  0xcb   : > { %959 = vmatmul.msk.f32.vlgmr.msra.gmra.mxu3 %vm506_vm1, %v505_v15 }
  0xce   : > { %v502_v29 = vpop.f32.mrf.mxu2 }
  0xcf   : > { %711 = vrot.lane.b32.xlu2 %v505_v15, %s1322_s23  ;;  %568 = vrot.lane.b32.xlu1 %v505_v15, %s1323_s28  ;;  %v503_v30 = vadd.f32 %v1072_v28, %v502_v29 }
  0xd0   : > { %640 = vrot.lane.b32.xlu0 %v505_v15, %s1324_s22  ;;  %v783_v15 = vld [vmem:[#allocation11] sm:$0xff] }
  0xd1   : > { %560 = vmatpush.msrb.mxu3 %v503_v30 }
 0x121   : > { %v714_v21 = vpop.permute.xlu2 %713 }
 0x129   : > { %v712_v25 = vpop.permute.xlu2 %711 }
 0x139   : > { %v571_v20 = vpop.permute.xlu1 %570 }
 0x13a   : > { %v643_v22 = vpop.permute.xlu0 %642  ;;  %961 = vmatpush.xpose.msk.msrb.mxu0 %vm506_vm1, %v571_v20  ;;  %v1073_v20 = vld [vmem:[%s1604_s8] ss:$0 sm:$0xff] }
 0x13b   : > { %964 = vmatpush.xpose.msk.msrb.mxu2 %vm506_vm1, %v643_v22 }
 0x13e   : > { %967 = vmatpush.xpose.msk.msra.mxu0 %vm506_vm1, %v714_v21 }
 0x13f   : > { %806 = vmatpush.msra.mxu2 %v786_v12 }
 0x141   : > { %v569_v23 = vpop.permute.xlu1 %568  ;;  %807 = vmatpush.msra.mxu2 %v785_v13 }
 0x142   : > { %v641_v24 = vpop.permute.xlu0 %640  ;;  %962 = vmatmul.msk.f32.vlgmr.msrb.gmra.mxu0 %vm506_vm1, %v569_v23 }
 0x143   : > { %965 = vmatmul.msk.f32.vlgmr.msrb.gmra.mxu2 %vm506_vm1, %v641_v24 }
 0x144   : > { %808 = vmatpush.msra.mxu2 %v784_v14 }
 0x146   : > { %809 = vmatpush.msra.mxu2 %v783_v15 }
 0x14a   : > { %968 = vmatmul.msk.f32.vlgmr.msra.gmra.mxu0 %vm506_vm1, %v712_v25 }
 0x14e   : > { %v530_v26 = vpop.f32.mrf.mxu3 }
 0x14f   : > { %v533_v27 = vsel %vm506_vm1, %v530_v26, -inf }
 0x150   : > { %534 = vmax.xlane.f32.xlu0 %v533_v27 }
 0x164   : > { %606 = vrot.lane.b32.xlu0 %v503_v30, %s1323_s28 }
 0x1bf   : > { %v593_v31 = vpop.f32.mrf.mxu0 }
 0x1c0   : > { %v596_v32 = vsel %vm506_vm1, %v593_v31, -inf }
 0x1c1   : > { %597 = vmax.xlane.f32.xlu1 %v596_v32 }
 0x1c3   : > { %v535_v33 = vpop.xlane.xlu0 %534 }
 0x1c4   : > { %v536_v34 = vsub.f32 %v530_v26, %v535_v33 }
 0x1c6   : > { %v537_v35 = vmul.f32 1.442695, %v536_v34  ;;  %v665_v36 = vpop.f32.mrf.mxu2 }
 0x1c7   : > { %v668_v37 = vsel %vm506_vm1, %v665_v36, -inf  ;;  %v736_v38 = vpop.f32.mrf.mxu0 }
 0x1c8   : > { %1074 = vpow2.f32 %v537_v35  ;;  %669 = vmax.xlane.f32.xlu2 %v668_v37  ;;  %v739_v40 = vsel %vm506_vm1, %v736_v38, -inf }
 0x1ce   : > { %v1075_v39 = vpop.eup %1074 }
 0x1cf   : > { %960 = vmatmul.msk.f32.vlgmr.msrb.gmra.mxu3 %vm506_vm1, %v1075_v39  ;;  %v539_v55 = vsel %vm506_vm1, %v1075_v39, 0.0 }
 0x1d0   : > { %740 = vmax.xlane.f32.xlu2 %v739_v40 }
 0x1d6   : > { %v607_v41 = vpop.permute.xlu0 %606 }
 0x1d7   : > { %627 = vmatpush.msrb.mxu1 %v607_v41 }
 0x1da   : > { %677 = vrot.lane.b32.xlu1 %v503_v30, %s1324_s22  ;;  %s830_s22 = sshll.u32 %s826_s3, 4  ;;  %s831_s22 = int_to_ptr.hbm [resolvable:$true] %s830_s22 }
 0x1db   : > { %s1254_s20 = sshra.s32 %s831_s22, 4  ;;  %s1255_s20 = int_to_ptr.hbm [resolvable:$true] %s1254_s20 }
 0x1dc   : > { %s1256_s21 = scalar_lea.hbm %s1255_s20, 8  ;;  %p1261_p12 = scmp.lt.s32.totalorder %s1255_s20, %s1605_s9 }
 0x1dd   : > { %p1257_p1 = scmp.ne.s32.totalorder %s1255_s20, %s1256_s21 }
 0x1df   : > { %p1258_p3 = pnand %p1257_p1, %p1465_p4 }
 0x1e1   : > { %p1259_p5 = pneg %p1258_p3 }
 0x1e8   : > { %748 = vrot.lane.b32.xlu2 %v503_v30, %s1322_s23  ;;  %s415_s23 = scalar_lea.vmem [#allocation12], %s949_s19  ;;  %s1260_s19 = scalar_lea.hbm %s1605_s9, 16 }
 0x1e9   : > { %s828_s28 = sshll.u32 %s415_s23, 4  ;;  %p1262_p7 = scmp.lt.s32.totalorder %s1260_s19, %s1256_s21  ;;  %s829_s28 = int_to_ptr.vmem [resolvable:$true] %s828_s28 }
 0x1eb   : > { %p1263_p8 = por %p1262_p7, %p1261_p12 }
 0x1ed   : > { %p1264_p9 = pnand %p1263_p8, %p1259_p5 }
 0x234   : > { %v598_v42 = vpop.xlane.xlu1 %597 }
 0x235   : > { %v599_v43 = vsub.f32 %v593_v31, %v598_v42 }
 0x237   : > { %v600_v44 = vmul.f32 1.442695, %v599_v43 }
 0x239   : > { %1076 = vpow2.f32 %v600_v44 }
 0x23b   : > { %v670_v45 = vpop.xlane.xlu2 %669 }
 0x23c   : > { %v671_v46 = vsub.f32 %v665_v36, %v670_v45 }
 0x23e   : > { %v672_v47 = vmul.f32 1.442695, %v671_v46 }
 0x23f   : > { %v1077_v48 = vpop.eup %1076 }
 0x240   : > { %1078 = vpow2.f32 %v672_v47  ;;  %963 = vmatmul.msk.f32.vlgmr.msrb.gmra.mxu1 %vm506_vm1, %v1077_v48  ;;  %v602_v49 = vsel %vm506_vm1, %v1077_v48, 0.0 }
 0x241   : > { %603 = vadd.xlane.f32.xlu0 %v602_v49 }
 0x243   : > { %v741_v50 = vpop.xlane.xlu2 %740 }
 0x244   : > { %v742_v51 = vsub.f32 %v736_v38, %v741_v50 }
 0x246   : > { %v1079_v52 = vpop.eup %1078  ;;  %v743_v53 = vmul.f32 1.442695, %v742_v51 }
 0x247   : > { %v674_v54 = vsel %vm506_vm1, %v1079_v52, 0.0 }
 0x248   : > { %1080 = vpow2.f32 %v743_v53  ;;  %675 = vadd.xlane.f32.xlu1 %v674_v54 }
 0x249   : > { %540 = vadd.xlane.f32.xlu0 %v539_v55 }
 0x24b   : > { %v749_v56 = vpop.permute.xlu2 %748 }
 0x24c   : > { %769 = vmatpush.msra.mxu1 %v749_v56  ;;  %v678_v57 = vpop.permute.xlu1 %677 }
 0x24d   : > { %698 = vmatpush.msra.mxu3 %v678_v57 }
 0x24e   : > { %v1081_v58 = vpop.eup %1080  ;;  %966 = vmatmul.msk.f32.vlgmr.msra.gmra.mxu3 %vm506_vm1, %v1079_v52 }
 0x24f   : > { %969 = vmatmul.msk.f32.vlgmr.msra.gmra.mxu1 %vm506_vm1, %v1081_v58  ;;  %v745_v59 = vsel %vm506_vm1, %v1081_v58, 0.0 }
 0x250   : > { %746 = vadd.xlane.f32.xlu2 %v745_v59 }
 0x252   : > { %v562_v2 = vpop.f32.mrf.mxu3 }
 0x2b4   : > { %v604_v60 = vpop.xlane.xlu0 %603 }
 0x2b5   : > { %1082 = vrcp.f32 %v604_v60 }
 0x2bb   : > { %v1083_v62 = vpop.eup %1082  ;;  %v676_v5 = vpop.xlane.xlu1 %675 }
 0x2bc   : > { %v541_v61 = vpop.xlane.xlu0 %540 }
 0x2bd   : > { %1084 = vrcp.f32 %v541_v61  ;;  %v629_v63 = vpop.f32.mrf.mxu1 }
 0x2be   : > { %v633_v0 = vmul.f32 %v1083_v62, %v629_v63 }
 0x2c0   : > { %635 = vrot.lane.b32.xlu1 %v633_v0, %s1325_s24 }
 0x2c3   : > { %v1085_v1 = vpop.eup %1084  ;;  %v747_v3 = vpop.xlane.xlu2 %746 }
 0x2c4   : > { %v566_v4 = vmul.f32 %v1085_v1, %v562_v2  ;;  %1086 = vrcp.f32 %v747_v3 }
 0x2c5   : > { %1088 = vrcp.f32 %v676_v5 }
 0x2c6   : > { %567 = vst.msk [vmem:[#allocation2] sm:$0xff] %vm506_vm1, %v566_v4 }
 0x2ca   : > { %v1087_v6 = vpop.eup %1086 }
 0x2cb   : > { %v1089_v9 = vpop.eup %1088 }
 0x2cc   : > { %v771_v7 = vpop.f32.mrf.mxu1 }
 0x2cd   : > { %v775_v8 = vmul.f32 %v1087_v6, %v771_v7 }
 0x2cf   : > { %777 = vrot.lane.b32.xlu2 %v775_v8, %s1326_s15 }
 0x2d1   : > { %v700_v10 = vpop.f32.mrf.mxu3 }
 0x2d2   : > { %v704_v11 = vmul.f32 %v1089_v9, %v700_v10 }
 0x2d4   : > { %706 = vrot.lane.b32.xlu0 %v704_v11, %s1327_s14 }
 0x329   : > { %v778_v18 = vpop.permute.xlu2 %777 }
 0x332   : > { %v636_v16 = vpop.permute.xlu1 %635 }
 0x333   : > { %639 = vst.msk [vmem:[#allocation2] sm:$0xff] %vm638_vm2, %v636_v16 }
 0x346   : > { %v707_v17 = vpop.permute.xlu0 %706 }
 0x347   : > { %710 = vst.msk [vmem:[#allocation2] sm:$0xff] %vm709_vm3, %v707_v17 }
 0x348   : > { %781 = vst.msk [vmem:[#allocation2] sm:$0xff] %vm780_vm4, %v778_v18 }
 0x34f   : > { %v782_v19 = vld [vmem:[#allocation2] sm:$0xff] }
 0x350   : > { %970 = vmatmul.msk.f32.vlgmr.msra.gmra.mxu2 %vm425_vm0, %v782_v19 }
 0x3d3   : > { %v811_v21 = vpop.f32.mrf.mxu2 }
 0x3d4   : > { %v812_v22 = vadd.f32 %v1073_v20, %v811_v21 }
 0x3d6   : > { %814 = vst.msk [vmem:[%s415_s23] sm:$0xff] %vm425_vm0, %v812_v22 }
 0x3d7   : > { %1267 = shalt.err (!%p1264_p9)
}
 0x3d8   : > { %993 = dma.vmem_to_hbm [thread:$0]  (%p1465_p4), %s829_s28, 128, %s831_s22, %s816_s16  }
 0x3d9 PF: > { %s842_s29 = sand.u32 1, %s1302_s30   ;;  %p1621_p10 = scmp.ge.s32.totalorder %s1314_s12, 2 }
 0x3da   : > { %s843_s5 = scalar_lea.sflag [#allocation5], %s842_s29 }
 0x3db   : > { %p1013_p13 = pnand %p1621_p10, %p1469_p6 }
 0x3dd   : > { %p1014_p11 = pneg %p1013_p13 }
 0x3df   : > { %1297 = dma.done.wait (%p1014_p11), %s843_s5, 128  }
 0x3e0   : > { %1299 = vsyncadd (%p1014_p11), %s843_s5, 4294967168  ;;  %p24_p0 = scmp.ge.s32.totalorder %s1439_s25, 4   ;;  %s1622_s30 = smov %s1306_s10 }
 0x3e1   : > { %s1623_s10 = smov %s1310_s11  ;;  %s1624_s11 = smov %s1450_s26 }
 0x3e2   : > { %s1625_s12 = smov %s1439_s25  ;;  %26 = sbr.rel (!%p24_p0) target bundleno = 12 (0xc), region = 117 }
 0x3e7   :  { %849 = vsyncpa [#allocation4], 1 }
 0x3e8   :  { %851 = vsyncpa [#allocation4 + $0x1], 1 }
 0x3e9   :  { %852 = vsyncpa [#allocation7], 1 }
 0x3ea   :  { %853 = vsyncpa [#allocation10], 1 }
 0x3eb   :  { %854 = vsyncpa [#allocation5], 1 }
 0x3ec   :  { %856 = vsyncpa [#allocation5 + $0x1], 1 }

// kernel: tpu_custom_call.1
= control target key start
LH: loop header
LB: loop body
LE: loop exit
PB: predicated region body
PF: predicated region fallthrough
CT: control target
= control target key end

     0   :  { %s1596_s0 = inlined_call_operand.hbm [shape: f32[2,8,32], index: 0, kind: input, shape index: {}]   ;;  %s1597_s1 = inlined_call_operand.hbm [shape: f32[32,32], index: 1, kind: input, shape index: {}]   ;;  %s1598_s2 = inlined_call_operand.vmem [shape: f32[1,32], index: 2, kind: input, shape index: {}]   ;;  %s1599_s3 = inlined_call_operand.hbm [shape: f32[32,32], index: 3, kind: input, shape index: {}]   ;;  %s1600_s4 = inlined_call_operand.vmem [shape: f32[1,32], index: 4, kind: input, shape index: {}]   ;;  %s1601_s5 = inlined_call_operand.hbm [shape: f32[32,32], index: 5, kind: input, shape index: {}]   ;;  %s1602_s6 = inlined_call_operand.vmem [shape: f32[1,32], index: 6, kind: input, shape index: {}]   ;;  %s1603_s7 = inlined_call_operand.hbm [shape: f32[32,32], index: 7, kind: input, shape index: {}]   ;;  %s1604_s8 = inlined_call_operand.vmem [shape: f32[1,32], index: 8, kind: input, shape index: {}]   ;;  %s1605_s9 = inlined_call_operand.hbm [shape: f32[2,8,32], index: 9, kind: output, shape index: {}]  }
   0x1   :  { %1606 = sst [smem:[#allocation17_spill]] %s1597_s1 }
   0x2   :  { %1607 = sst [smem:[#allocation18_spill]] %s1599_s3 }
   0x3   :  { %1608 = sst [smem:[#allocation19_spill]] %s1601_s5 }
   0x4   :  { %1609 = sst [smem:[#allocation20_spill]] %s1603_s7 }
   0x5   :  { %14 = vsyncpa [#allocation4], 0 }
   0x6   :  { %16 = vsyncpa [#allocation4 + $0x1], 0 }
   0x7   :  { %17 = vsyncpa [#allocation7], 0 }
   0x8   :  { %18 = vsyncpa [#allocation10], 0 }
   0x9   :  { %19 = vsyncpa [#allocation5], 0 }
   0xa   :  { %21 = vsyncpa [#allocation5 + $0x1], 0  ;;  %s1378_s30 = smov 0   ;;  %s1380_s10 = smov 0  }
   0xb   :  { %s1382_s11 = smov 0   ;;  %s1384_s12 = smov 0  }
   0xc LB: > { %s1610_s1 = sld [smem:[#allocation17_spill]]  ;;  %s1402_s16 = sadd.s32 4294967295, %s1314_s12   ;;  %s1314_s12 = sphi %s1384_s12, %s1625_s12   ;;  %s1310_s11 = sphi %s1382_s11, %s1624_s11   ;;  %s1306_s10 = sphi %s1380_s10, %s1623_s10   ;;  %s1302_s30 = sphi %s1378_s30, %s1622_s30  }
   0xd   : > { %p940_p0 = scmp.ge.s32.totalorder %s1314_s12, 1  ;;  %p48_p1 = scmp.eq.s32.totalorder %s1402_s16, 0 }
   0xe   : > { %p252_p2 = scmp.lt.s32.totalorder %s1314_s12, 3  ;;  %s1316_s18 = smov [#allocation6]  }
   0xf   : > { %s265_s19 = sshll.u32 %s1316_s18, 4  ;;  %s1612_s5 = sld [smem:[#allocation19_spill]]  ;;  %s266_s19 = int_to_ptr.vmem [resolvable:$true] %s265_s19 }
  0x10   : > { %p1407_p3 = pnand %p940_p0, %p252_p2  ;;  %s1614_s3 = sld [smem:[#allocation18_spill]] }
  0x11   : > { %s1317_s27 = smov [#allocation9]   ;;  %s1318_s29 = smov 128  }
  0x12   : > { %s263_s15 = sshll.u32 %s1610_s1, 4  ;;  %p995_p4 = pneg %p1407_p3  ;;  %s264_s15 = int_to_ptr.hbm [resolvable:$true] %s263_s15 }
  0x13   : > { %s299_s28 = sshll.u32 %s1317_s27, 4  ;;  %s1319_s13 = smov 8   ;;  %s300_s28 = int_to_ptr.vmem [resolvable:$true] %s299_s28 }
  0x14   : > { %p1419_p6 = pnand %p995_p4, %p48_p1  ;;  %s1615_s7 = sld [smem:[#allocation20_spill]] }
  0x15   : > { %s297_s22 = sshll.u32 %s1612_s5, 4  ;;  %s1320_s21 = smov [#allocation8]   ;;  %s298_s22 = int_to_ptr.hbm [resolvable:$true] %s297_s22 }
  0x16   : > { %s280_s26 = sshll.u32 %s1614_s3, 4  ;;  %s282_s24 = sshll.u32 %s1320_s21, 4  ;;  %s281_s26 = int_to_ptr.hbm [resolvable:$true] %s280_s26  ;;  %s283_s24 = int_to_ptr.vmem [resolvable:$true] %s282_s24 }
  0x17   : > { %998 = dma.hbm_to_vmem [thread:$0]  (!%p1419_p6), %s264_s15, 512, %s266_s19, [#allocation7], %s1318_s29, %s1318_s29, %s1319_s13  }
  0x18   : > { %1004 = dma.hbm_to_vmem [thread:$0]  (!%p1419_p6), %s298_s22, 512, %s300_s28, [#allocation10], %s1318_s29, %s1318_s29, %s1319_s13  }
  0x19   : > { %1001 = dma.hbm_to_vmem [thread:$0]  (!%p1419_p6), %s281_s26, 512, %s283_s24, [#allocation7], %s1318_s29, %s1318_s29, %s1319_s13  }
  0x1a   : > { %s314_s20 = sshll.u32 %s1615_s7, 4  ;;  %s1321_s15 = smov [#allocation11]   ;;  %s315_s20 = int_to_ptr.hbm [resolvable:$true] %s314_s20 }
  0x1b   : > { %s316_s19 = sshll.u32 %s1321_s15, 4  ;;  %s939_s22 = sadd.s32 4294967294, %s1314_s12   ;;  %s317_s19 = int_to_ptr.vmem [resolvable:$true] %s316_s19 }
  0x1c   : > { %1007 = dma.hbm_to_vmem [thread:$0]  (!%p1419_p6), %s315_s20, 512, %s317_s19, [#allocation10], %s1318_s29, %s1318_s29, %s1319_s13  }
  0x1d   : > { %s1439_s25 = sadd.s32 1, %s1314_s12   ;;  %s34_s28 = sadd.s32 1, %s1310_s11 }
  0x1e   : > { %s31_s27 = ssub.s32 %s1314_s12, %s1439_s25  ;;  %p41_p8 = scmp.ne.s32.totalorder %s1310_s11, %s1306_s10 }
  0x1f   : > { %p32_p7 = scmp.eq.s32.totalorder %s31_s27, 0  ;;  %p42_p9 = scmp.eq.s32.totalorder %s1314_s12, 0 }
  0x20   : > { %p47_p10 = scmp.ne.s32.totalorder %s1306_s10, %s1302_s30  ;;  %p239_p13 = scmp.eq.s32.totalorder %s1402_s16, 1 }
  0x21   : > { %s1450_s26 = scalar_select %p32_p7, %s1310_s11, %s34_s28  }
  0x22   : > { %p1452_p11 = por %p42_p9, %p41_p8  ;;  %p1458_p12 = por %p48_p1, %p47_p10 }
  0x23   : > { %p245_p0 = scmp.eq.s32.totalorder %s939_s22, 1  ;;  %p1020_p2 = scmp.lt.s32.totalorder %s1314_s12, 2 }
  0x24   : > { %s333_s29 = sand.u32 1, %s1310_s11   ;;  %p1465_p4 = por %p239_p13, %p41_p8 }
  0x25   : > { %p1469_p6 = por %p245_p0, %p47_p10  ;;  %s946_s20 = sshll.u32 %s333_s29, 3 }
  0x26   : > { %s947_s21 = sshll.u32 %s1314_s12, 3  ;;  %s337_s27 = scalar_lea.vmem [#allocation3], %s946_s20 }
  0x27   : > { %s341_s19 = scalar_lea.hbm %s1596_s0, %s947_s21  ;;  %s345_s28 = sshll.u32 %s337_s27, 4  ;;  %s346_s28 = int_to_ptr.vmem [resolvable:$true] %s345_s28 }
  0x28   : > { %s343_s1 = sshll.u32 %s341_s19, 4  ;;  %p1479_p7 = pnand %p1020_p2, %p1452_p11  ;;  %s344_s1 = int_to_ptr.hbm [resolvable:$true] %s343_s1 }
  0x29   : > { %s334_s3 = scalar_lea.sflag [#allocation4], %s333_s29  ;;  %s1210_s5 = sshra.s32 %s344_s1, 4  ;;  %s1211_s5 = int_to_ptr.hbm [resolvable:$true] %s1210_s5 }
  0x2a   : > { %s1212_s7 = scalar_lea.hbm %s1211_s5, 8  ;;  %p1214_p9 = pneg %p1479_p7 }
  0x2b   : > { %p1213_p8 = scmp.ne.s32.totalorder %s1211_s5, %s1212_s7  ;;  %s1217_s24 = scalar_lea.hbm %s1596_s0, 16 }
  0x2c   : > { %p1218_p11 = scmp.lt.s32.totalorder %s1211_s5, %s1596_s0  ;;  %p1219_p0 = scmp.lt.s32.totalorder %s1217_s24, %s1212_s7 }
  0x2d   : > { %p1215_p10 = pnand %p1214_p9, %p1213_p8 }
  0x2e   : > { %p1220_p2 = por %p1219_p0, %p1218_p11 }
  0x2f   : > { %p1216_p13 = pneg %p1215_p10 }
  0x31   : > { %p1221_p5 = pnand %p1220_p2, %p1216_p13 }
  0x33   : > { %1224 = shalt.err (!%p1221_p5)
}
  0x34   : > { %1011 = dma.hbm_to_vmem [thread:$0]  (!%p1479_p7), %s344_s1, 128, %s346_s28, %s334_s3  }
  0x35   : > { %354 = sbr.rel (%p1407_p3) target bundleno = 985 (0x3d9), region = 56  ;;  %s1496_s29 = sand.u32 (!%p1407_p3), 1, %s1306_s10  }
  0x36   : > { %s949_s19 = sshll.u32 (!%p1407_p3), %s1496_s29, 3  ;;  %s357_s27 = scalar_lea.sflag (!%p1407_p3), [#allocation4], %s1496_s29 }
  0x37   : > { %s360_s5 = scalar_lea.vmem (!%p1407_p3), [#allocation3], %s949_s19 }
  0x3a   : > { %1285 = dma.done.wait (%p1458_p12), %s357_s27, 128  }
  0x3b   : > { %1287 = vsyncadd (%p1458_p12), %s357_s27, 4294967168 }
  0x3c   : > { %1289 = dma.done.wait (%p48_p1), [#allocation7], 1024  }
  0x3d   : > { %1291 = vsyncadd (%p48_p1), [#allocation7], 4294966272 }
  0x3e   : > { %1293 = dma.done.wait (%p48_p1), [#allocation10], 1024  }
  0x3f   : > { %1295 = vsyncadd (%p48_p1), [#allocation10], 4294966272  ;;  %v452_v0 = vld [vmem:[#allocation8 + $0x18] sm:$0xff]  ;;  %v451_v2 = vld [vmem:[#allocation8 + $0x10] sm:$0xff]  ;;  %vm425_vm0 = vcmask 261120   ;;  %vm506_vm1 = vcmask 64512  }
  0x40   : > { %v420_v1 = vld [vmem:[#allocation6 + $0x18] sm:$0xff]  ;;  %469 = vmatpush.msra.mxu1 %v452_v0  ;;  %v419_v3 = vld [vmem:[#allocation6 + $0x10] sm:$0xff]  ;;  %v450_v4 = vld [vmem:[#allocation8 + $0x8] sm:$0xff]  ;;  %s1322_s23 = smov 104   ;;  %s1323_s28 = smov 120   ;;  %vm638_vm2 = vcmask 130112  }
  0x41   : > { %441 = vmatpush.msra.mxu0 %v420_v1  ;;  %v418_v5 = vld [vmem:[#allocation6 + $0x8] sm:$0xff]  ;;  %v449_v6 = vld [vmem:[#allocation8] sm:$0xff]  ;;  %v416_v8 = vld [vmem:[%s360_s5] sm:$0xff]  ;;  %s1324_s22 = smov 112   ;;  %s1325_s24 = smov 8   ;;  %vm709_vm3 = vcmask 195712  }
  0x42   : > { %470 = vmatpush.msra.mxu1 %v451_v2  ;;  %v417_v7 = vld [vmem:[#allocation6] sm:$0xff]  ;;  %v1070_v9 = vld [vmem:[%s1600_s4] ss:$0 sm:$0xff]  ;;  %v480_v16 = vld [vmem:[#allocation9 + $0x18] sm:$0xff]  ;;  %s1326_s15 = smov 24   ;;  %s1327_s14 = smov 16  }
  0x43   : > { %442 = vmatpush.msra.mxu0 %v419_v3  ;;  %v1071_v10 = vld [vmem:[%s1598_s2] ss:$0 sm:$0xff]  ;;  %v479_v17 = vld [vmem:[#allocation9 + $0x10] sm:$0xff]  ;;  %497 = vmatpush.msra.mxu2 %v480_v16  ;;  %v477_v19 = vld [vmem:[#allocation9] sm:$0xff]  ;;  %vm780_vm4 = vcmask 261312   ;;  %s972_s27 = sshll.u32 %s1402_s16, 3 }
  0x44   : > { %471 = vmatpush.msra.mxu1 %v450_v4  ;;  %v478_v18 = vld [vmem:[#allocation9 + $0x8] sm:$0xff]  ;;  %s826_s3 = scalar_lea.hbm %s1605_s9, %s972_s27  ;;  %s816_s16 = scalar_lea.sflag [#allocation5], %s1496_s29 }
  0x45   : > { %443 = vmatpush.msra.mxu0 %v418_v5  ;;  %498 = vmatpush.msra.mxu2 %v479_v17  ;;  %v1072_v28 = vld [vmem:[%s1602_s6] ss:$0 sm:$0xff] }
  0x46   : > { %472 = vmatpush.msra.mxu1 %v449_v6 }
  0x47   : > { %444 = vmatpush.msra.mxu0 %v417_v7  ;;  %956 = vmatmul.msk.f32.vlgmr.msra.gmra.mxu1 %vm425_vm0, %v416_v8 }
  0x48   : > { %955 = vmatmul.msk.f32.vlgmr.msra.gmra.mxu0 %vm425_vm0, %v416_v8  ;;  %499 = vmatpush.msra.mxu2 %v478_v18 }
  0x4a   : > { %500 = vmatpush.msra.mxu2 %v477_v19 }
  0x4b   : > { %957 = vmatmul.msk.f32.vlgmr.msra.gmra.mxu2 %vm425_vm0, %v416_v8 }
  0xc4   : > { %v474_v11 = vpop.f32.mrf.mxu1 }
  0xc5   : > { %v446_v12 = vpop.f32.mrf.mxu0  ;;  %v475_v13 = vadd.f32 %v1070_v9, %v474_v11 }
  0xc6   : > { %v447_v14 = vadd.f32 %v1071_v10, %v446_v12  ;;  %v786_v12 = vld [vmem:[#allocation11 + $0x18] sm:$0xff] }
  0xc7   : > { %713 = vrot.lane.b32.xlu2 %v475_v13, %s1322_s23  ;;  %570 = vrot.lane.b32.xlu1 %v475_v13, %s1323_s28 }
  0xc8   : > { %v505_v15 = vmul.f32 0.35355338, %v447_v14  ;;  %642 = vrot.lane.b32.xlu0 %v475_v13, %s1324_s22  ;;  %958 = vmatpush.xpose.msk.msra.mxu3 %vm506_vm1, %v475_v13  ;;  %v785_v13 = vld [vmem:[#allocation11 + $0x10] sm:$0xff]  ;;  %v784_v14 = vld [vmem:[#allocation11 + $0x8] sm:$0xff] }
  0xcb   : > { %959 = vmatmul.msk.f32.vlgmr.msra.gmra.mxu3 %vm506_vm1, %v505_v15 }
  0xce   : > { %v502_v29 = vpop.f32.mrf.mxu2 }
  0xcf   : > { %711 = vrot.lane.b32.xlu2 %v505_v15, %s1322_s23  ;;  %568 = vrot.lane.b32.xlu1 %v505_v15, %s1323_s28  ;;  %v503_v30 = vadd.f32 %v1072_v28, %v502_v29 }
  0xd0   : > { %640 = vrot.lane.b32.xlu0 %v505_v15, %s1324_s22  ;;  %v783_v15 = vld [vmem:[#allocation11] sm:$0xff] }
  0xd1   : > { %560 = vmatpush.msrb.mxu3 %v503_v30 }
 0x121   : > { %v714_v21 = vpop.permute.xlu2 %713 }
 0x129   : > { %v712_v25 = vpop.permute.xlu2 %711 }
 0x139   : > { %v571_v20 = vpop.permute.xlu1 %570 }
 0x13a   : > { %v643_v22 = vpop.permute.xlu0 %642  ;;  %961 = vmatpush.xpose.msk.msrb.mxu0 %vm506_vm1, %v571_v20  ;;  %v1073_v20 = vld [vmem:[%s1604_s8] ss:$0 sm:$0xff] }
 0x13b   : > { %964 = vmatpush.xpose.msk.msrb.mxu2 %vm506_vm1, %v643_v22 }
 0x13e   : > { %967 = vmatpush.xpose.msk.msra.mxu0 %vm506_vm1, %v714_v21 }
 0x13f   : > { %806 = vmatpush.msra.mxu2 %v786_v12 }
 0x141   : > { %v569_v23 = vpop.permute.xlu1 %568  ;;  %807 = vmatpush.msra.mxu2 %v785_v13 }
 0x142   : > { %v641_v24 = vpop.permute.xlu0 %640  ;;  %962 = vmatmul.msk.f32.vlgmr.msrb.gmra.mxu0 %vm506_vm1, %v569_v23 }
 0x143   : > { %965 = vmatmul.msk.f32.vlgmr.msrb.gmra.mxu2 %vm506_vm1, %v641_v24 }
 0x144   : > { %808 = vmatpush.msra.mxu2 %v784_v14 }
 0x146   : > { %809 = vmatpush.msra.mxu2 %v783_v15 }
 0x14a   : > { %968 = vmatmul.msk.f32.vlgmr.msra.gmra.mxu0 %vm506_vm1, %v712_v25 }
 0x14e   : > { %v530_v26 = vpop.f32.mrf.mxu3 }
 0x14f   : > { %v533_v27 = vsel %vm506_vm1, %v530_v26, -inf }
 0x150   : > { %534 = vmax.xlane.f32.xlu0 %v533_v27 }
 0x164   : > { %606 = vrot.lane.b32.xlu0 %v503_v30, %s1323_s28 }
 0x1bf   : > { %v593_v31 = vpop.f32.mrf.mxu0 }
 0x1c0   : > { %v596_v32 = vsel %vm506_vm1, %v593_v31, -inf }
 0x1c1   : > { %597 = vmax.xlane.f32.xlu1 %v596_v32 }
 0x1c3   : > { %v535_v33 = vpop.xlane.xlu0 %534 }
 0x1c4   : > { %v536_v34 = vsub.f32 %v530_v26, %v535_v33 }
 0x1c6   : > { %v537_v35 = vmul.f32 1.442695, %v536_v34  ;;  %v665_v36 = vpop.f32.mrf.mxu2 }
 0x1c7   : > { %v668_v37 = vsel %vm506_vm1, %v665_v36, -inf  ;;  %v736_v38 = vpop.f32.mrf.mxu0 }
 0x1c8   : > { %1074 = vpow2.f32 %v537_v35  ;;  %669 = vmax.xlane.f32.xlu2 %v668_v37  ;;  %v739_v40 = vsel %vm506_vm1, %v736_v38, -inf }
 0x1ce   : > { %v1075_v39 = vpop.eup %1074 }
 0x1cf   : > { %960 = vmatmul.msk.f32.vlgmr.msrb.gmra.mxu3 %vm506_vm1, %v1075_v39  ;;  %v539_v55 = vsel %vm506_vm1, %v1075_v39, 0.0 }
 0x1d0   : > { %740 = vmax.xlane.f32.xlu2 %v739_v40 }
 0x1d6   : > { %v607_v41 = vpop.permute.xlu0 %606 }
 0x1d7   : > { %627 = vmatpush.msrb.mxu1 %v607_v41 }
 0x1da   : > { %677 = vrot.lane.b32.xlu1 %v503_v30, %s1324_s22  ;;  %s830_s22 = sshll.u32 %s826_s3, 4  ;;  %s831_s22 = int_to_ptr.hbm [resolvable:$true] %s830_s22 }
 0x1db   : > { %s1254_s20 = sshra.s32 %s831_s22, 4  ;;  %s1255_s20 = int_to_ptr.hbm [resolvable:$true] %s1254_s20 }
 0x1dc   : > { %s1256_s21 = scalar_lea.hbm %s1255_s20, 8  ;;  %p1261_p12 = scmp.lt.s32.totalorder %s1255_s20, %s1605_s9 }
 0x1dd   : > { %p1257_p1 = scmp.ne.s32.totalorder %s1255_s20, %s1256_s21 }
 0x1df   : > { %p1258_p3 = pnand %p1257_p1, %p1465_p4 }
 0x1e1   : > { %p1259_p5 = pneg %p1258_p3 }
 0x1e8   : > { %748 = vrot.lane.b32.xlu2 %v503_v30, %s1322_s23  ;;  %s415_s23 = scalar_lea.vmem [#allocation12], %s949_s19  ;;  %s1260_s19 = scalar_lea.hbm %s1605_s9, 16 }
 0x1e9   : > { %s828_s28 = sshll.u32 %s415_s23, 4  ;;  %p1262_p7 = scmp.lt.s32.totalorder %s1260_s19, %s1256_s21  ;;  %s829_s28 = int_to_ptr.vmem [resolvable:$true] %s828_s28 }
 0x1eb   : > { %p1263_p8 = por %p1262_p7, %p1261_p12 }
 0x1ed   : > { %p1264_p9 = pnand %p1263_p8, %p1259_p5 }
 0x234   : > { %v598_v42 = vpop.xlane.xlu1 %597 }
 0x235   : > { %v599_v43 = vsub.f32 %v593_v31, %v598_v42 }
 0x237   : > { %v600_v44 = vmul.f32 1.442695, %v599_v43 }
 0x239   : > { %1076 = vpow2.f32 %v600_v44 }
 0x23b   : > { %v670_v45 = vpop.xlane.xlu2 %669 }
 0x23c   : > { %v671_v46 = vsub.f32 %v665_v36, %v670_v45 }
 0x23e   : > { %v672_v47 = vmul.f32 1.442695, %v671_v46 }
 0x23f   : > { %v1077_v48 = vpop.eup %1076 }
 0x240   : > { %1078 = vpow2.f32 %v672_v47  ;;  %963 = vmatmul.msk.f32.vlgmr.msrb.gmra.mxu1 %vm506_vm1, %v1077_v48  ;;  %v602_v49 = vsel %vm506_vm1, %v1077_v48, 0.0 }
 0x241   : > { %603 = vadd.xlane.f32.xlu0 %v602_v49 }
 0x243   : > { %v741_v50 = vpop.xlane.xlu2 %740 }
 0x244   : > { %v742_v51 = vsub.f32 %v736_v38, %v741_v50 }
 0x246   : > { %v1079_v52 = vpop.eup %1078  ;;  %v743_v53 = vmul.f32 1.442695, %v742_v51 }
 0x247   : > { %v674_v54 = vsel %vm506_vm1, %v1079_v52, 0.0 }
 0x248   : > { %1080 = vpow2.f32 %v743_v53  ;;  %675 = vadd.xlane.f32.xlu1 %v674_v54 }
 0x249   : > { %540 = vadd.xlane.f32.xlu0 %v539_v55 }
 0x24b   : > { %v749_v56 = vpop.permute.xlu2 %748 }
 0x24c   : > { %769 = vmatpush.msra.mxu1 %v749_v56  ;;  %v678_v57 = vpop.permute.xlu1 %677 }
 0x24d   : > { %698 = vmatpush.msra.mxu3 %v678_v57 }
 0x24e   : > { %v1081_v58 = vpop.eup %1080  ;;  %966 = vmatmul.msk.f32.vlgmr.msra.gmra.mxu3 %vm506_vm1, %v1079_v52 }
 0x24f   : > { %969 = vmatmul.msk.f32.vlgmr.msra.gmra.mxu1 %vm506_vm1, %v1081_v58  ;;  %v745_v59 = vsel %vm506_vm1, %v1081_v58, 0.0 }
 0x250   : > { %746 = vadd.xlane.f32.xlu2 %v745_v59 }
 0x252   : > { %v562_v2 = vpop.f32.mrf.mxu3 }
 0x2b4   : > { %v604_v60 = vpop.xlane.xlu0 %603 }
 0x2b5   : > { %1082 = vrcp.f32 %v604_v60 }
 0x2bb   : > { %v1083_v62 = vpop.eup %1082  ;;  %v676_v5 = vpop.xlane.xlu1 %675 }
 0x2bc   : > { %v541_v61 = vpop.xlane.xlu0 %540 }
 0x2bd   : > { %1084 = vrcp.f32 %v541_v61  ;;  %v629_v63 = vpop.f32.mrf.mxu1 }
 0x2be   : > { %v633_v0 = vmul.f32 %v1083_v62, %v629_v63 }
 0x2c0   : > { %635 = vrot.lane.b32.xlu1 %v633_v0, %s1325_s24 }
 0x2c3   : > { %v1085_v1 = vpop.eup %1084  ;;  %v747_v3 = vpop.xlane.xlu2 %746 }
 0x2c4   : > { %v566_v4 = vmul.f32 %v1085_v1, %v562_v2  ;;  %1086 = vrcp.f32 %v747_v3 }
 0x2c5   : > { %1088 = vrcp.f32 %v676_v5 }
 0x2c6   : > { %567 = vst.msk [vmem:[#allocation2] sm:$0xff] %vm506_vm1, %v566_v4 }
 0x2ca   : > { %v1087_v6 = vpop.eup %1086 }
 0x2cb   : > { %v1089_v9 = vpop.eup %1088 }
 0x2cc   : > { %v771_v7 = vpop.f32.mrf.mxu1 }
 0x2cd   : > { %v775_v8 = vmul.f32 %v1087_v6, %v771_v7 }
 0x2cf   : > { %777 = vrot.lane.b32.xlu2 %v775_v8, %s1326_s15 }
 0x2d1   : > { %v700_v10 = vpop.f32.mrf.mxu3 }
 0x2d2   : > { %v704_v11 = vmul.f32 %v1089_v9, %v700_v10 }
 0x2d4   : > { %706 = vrot.lane.b32.xlu0 %v704_v11, %s1327_s14 }
 0x329   : > { %v778_v18 = vpop.permute.xlu2 %777 }
 0x332   : > { %v636_v16 = vpop.permute.xlu1 %635 }
 0x333   : > { %639 = vst.msk [vmem:[#allocation2] sm:$0xff] %vm638_vm2, %v636_v16 }
 0x346   : > { %v707_v17 = vpop.permute.xlu0 %706 }
 0x347   : > { %710 = vst.msk [vmem:[#allocation2] sm:$0xff] %vm709_vm3, %v707_v17 }
 0x348   : > { %781 = vst.msk [vmem:[#allocation2] sm:$0xff] %vm780_vm4, %v778_v18 }
 0x34f   : > { %v782_v19 = vld [vmem:[#allocation2] sm:$0xff] }
 0x350   : > { %970 = vmatmul.msk.f32.vlgmr.msra.gmra.mxu2 %vm425_vm0, %v782_v19 }
 0x3d3   : > { %v811_v21 = vpop.f32.mrf.mxu2 }
 0x3d4   : > { %v812_v22 = vadd.f32 %v1073_v20, %v811_v21 }
 0x3d6   : > { %814 = vst.msk [vmem:[%s415_s23] sm:$0xff] %vm425_vm0, %v812_v22 }
 0x3d7   : > { %1267 = shalt.err (!%p1264_p9)
}
 0x3d8   : > { %993 = dma.vmem_to_hbm [thread:$0]  (%p1465_p4), %s829_s28, 128, %s831_s22, %s816_s16  }
 0x3d9 PF: > { %s842_s29 = sand.u32 1, %s1302_s30   ;;  %p1621_p10 = scmp.ge.s32.totalorder %s1314_s12, 2 }
 0x3da   : > { %s843_s5 = scalar_lea.sflag [#allocation5], %s842_s29 }
 0x3db   : > { %p1013_p13 = pnand %p1621_p10, %p1469_p6 }
 0x3dd   : > { %p1014_p11 = pneg %p1013_p13 }
 0x3df   : > { %1297 = dma.done.wait (%p1014_p11), %s843_s5, 128  }
 0x3e0   : > { %1299 = vsyncadd (%p1014_p11), %s843_s5, 4294967168  ;;  %p24_p0 = scmp.ge.s32.totalorder %s1439_s25, 4   ;;  %s1622_s30 = smov %s1306_s10 }
 0x3e1   : > { %s1623_s10 = smov %s1310_s11  ;;  %s1624_s11 = smov %s1450_s26 }
 0x3e2   : > { %s1625_s12 = smov %s1439_s25  ;;  %26 = sbr.rel (!%p24_p0) target bundleno = 12 (0xc), region = 117 }
 0x3e7   :  { %849 = vsyncpa [#allocation4], 1 }
 0x3e8   :  { %851 = vsyncpa [#allocation4 + $0x1], 1 }
 0x3e9   :  { %852 = vsyncpa [#allocation7], 1 }
 0x3ea   :  { %853 = vsyncpa [#allocation10], 1 }
 0x3eb   :  { %854 = vsyncpa [#allocation5], 1 }
 0x3ec   :  { %856 = vsyncpa [#allocation5 + $0x1], 1 }

</bundles_post_ra>
